<compile_context>
chip_gen: v7x
topology: tpu7x:2x2x1
jax: 0.10.0
libtpu: 0.0.40
codegen_flags: <defaults>
</compile_context>

<pallas_src>
import functools

import jax
import jax.numpy as jnp
from jax.experimental import pallas as pl
from jax.experimental.pallas import tpu as pltpu

LANE = 128  # vreg lane width; feature axes padded to a multiple of this


def _round_up(x, m):
    return ((x + m - 1) // m) * m


def _pick_tile(n, desired, align):
    """Largest multiple of `align` that divides n and is <= desired; else full n."""
    t = (min(desired, n) // align) * align
    while t >= align:
        if n % t == 0:
            return t
        t -= align
    return n  # full extent is always a legal block shape


def _vmem_limit(footprint_bytes):
    # 2x headroom for compiler internal scratch; floor 8 MiB, cap 96 MiB.
    return int(min(96 << 20, max(2 * footprint_bytes, 8 << 20)))


# ----------------------------------------------------------------------------
# Kernel 1: HW = H @ W_i   (hoisted per layer, row-tiled, bf16 in / bf16 out)
# ----------------------------------------------------------------------------
def _hw_kernel(h_ref, w_ref, hw_ref):
    hw_ref[...] = jnp.dot(h_ref[...], w_ref[...],
                          preferred_element_type=jnp.float32).astype(hw_ref.dtype)


def _matmul_hw(h, w, *, tm_hw):
    N, in_w = h.shape
    lane_w = w.shape[1]
    tm = _pick_tile(N, tm_hw, 8)
    footprint = 2 * (tm * in_w * 2 + in_w * lane_w * 2 + tm * lane_w * 2)
    return pl.pallas_call(
        _hw_kernel,
        out_shape=jax.ShapeDtypeStruct((N, lane_w), jnp.bfloat16),
        grid=(N // tm,),
        in_specs=[pl.BlockSpec((tm, in_w), lambda i: (i, 0)),
                  pl.BlockSpec((in_w, lane_w), lambda i: (0, 0))],
        out_specs=pl.BlockSpec((tm, lane_w), lambda i: (i, 0)),
        compiler_params=pltpu.CompilerParams(
            dimension_semantics=("parallel",),
            vmem_limit_bytes=_vmem_limit(footprint)),
    )(h, w)


# ----------------------------------------------------------------------------
# Kernel 2: relu(A @ HW + b)  (+ masked log_softmax on the last layer only)
# ----------------------------------------------------------------------------
def _make_layer_kernel(is_last, num_classes):
    def kernel(a_ref, hw_ref, b_ref, o_ref, acc_ref):
        k = pl.program_id(1)

        @pl.when(k == 0)
        def _():
            acc_ref[...] = jnp.zeros_like(acc_ref)

        acc_ref[...] += jnp.dot(a_ref[...], hw_ref[...],
                                preferred_element_type=jnp.float32)

        @pl.when(k == pl.num_programs(1) - 1)
        def _():
            # f32 epilogue on the VPU (padded bias entries are exactly 0, so
            # padded columns stay exactly 0 through bias + ReLU).
            h = jnp.maximum(acc_ref[...] + b_ref[...], 0.0)
            if is_last:
                # log_softmax over the real class columns only; padded lanes are
                # pushed to -1e30 so they contribute ~0 to the logsumexp.
                col = jax.lax.broadcasted_iota(jnp.int32, h.shape, 1)
                logits = jnp.where(col < num_classes, h, jnp.float32(-1e30))
                m = jnp.max(logits, axis=1, keepdims=True)
                s = logits - m
                lse = jnp.log(jnp.sum(jnp.exp(s), axis=1, keepdims=True))
                o_ref[...] = (s - lse).astype(o_ref.dtype)
            else:
                o_ref[...] = h.astype(o_ref.dtype)

    return kernel


def _spmm_layer(a_bf16, hw, b, *, is_last, num_classes, tm, tk):
    N = a_bf16.shape[0]
    lane_w = hw.shape[1]
    tm_ = _pick_tile(N, tm, 8)
    tk_ = _pick_tile(N, tk, LANE)
    # Last layer returns f32 log-probs (fed to NLL loss / reference check);
    # hidden layers return bf16 (the next layer's MXU input is bf16 anyway),
    # halving the intermediate HBM writeback + next-layer read.
    out_dtype = jnp.float32 if is_last else jnp.bfloat16
    out_bytes = 4 if is_last else 2
    footprint = (2 * (tm_ * tk_ * 2 + tk_ * lane_w * 2 + lane_w * 4
                      + tm_ * lane_w * out_bytes)
                 + tm_ * lane_w * 4)
    return pl.pallas_call(
        _make_layer_kernel(is_last, num_classes),
        out_shape=jax.ShapeDtypeStruct((N, lane_w), out_dtype),
        grid=(N // tm_, N // tk_),
        in_specs=[pl.BlockSpec((tm_, tk_), lambda i, k: (i, k)),       # A tile (bf16)
                  pl.BlockSpec((tk_, lane_w), lambda i, k: (k, 0)),    # HW tile (bf16)
                  pl.BlockSpec((1, lane_w), lambda i, k: (0, 0))],     # bias (f32)
        out_specs=pl.BlockSpec((tm_, lane_w), lambda i, k: (i, 0)),
        scratch_shapes=[pltpu.VMEM((tm_, lane_w), jnp.float32)],
        compiler_params=pltpu.CompilerParams(
            dimension_semantics=("parallel", "arbitrary"),
            vmem_limit_bytes=_vmem_limit(footprint)),
    )(a_bf16, hw, b)


# ----------------------------------------------------------------------------
# Wrapper
# ----------------------------------------------------------------------------
@functools.partial(jax.jit, static_argnames=("tm", "tk", "tm_hw"))
def hypergcn_forward(A, H, weights, biases, *, tm=512, tk=512, tm_hw=512):
    """l-layer HyperGCN forward (eval).  Returns (log_softmax(H), 0.0)."""
    N, d = H.shape
    num_layers = len(weights)
    num_classes = weights[-1].shape[1]

    lane_w = max(LANE, _round_up(max(w.shape[1] for w in weights), LANE))
    in0_w = max(LANE, _round_up(d, LANE))

    # A is re-read every layer: cast it to bf16 once here (halves the dominant
    # HBM stream).  Callers reusing A across forward calls can pass bf16 A and
    # skip even this single pass.
    a_bf16 = A if A.dtype == jnp.bfloat16 else A.astype(jnp.bfloat16)

    # Pre-pad + pre-cast parameters to a uniform lane-dense 128 layout.
    # Zero-padded W columns / bias entries keep padded activation columns at
    # exactly 0 through bias + ReLU, preserving the math of the real columns.
    h_cur = jnp.pad(H, ((0, 0), (0, in0_w - d))).astype(jnp.bfloat16)
    padded_ws, padded_bs = [], []
    for i, (W, b) in enumerate(zip(weights, biases)):
        fan_in, fan_out = W.shape
        in_w = in0_w if i == 0 else lane_w
        padded_ws.append(jnp.pad(W, ((0, in_w - fan_in),
                                     (0, lane_w - fan_out))).astype(jnp.bfloat16))
        padded_bs.append(jnp.pad(b.reshape(1, fan_out),
                                 ((0, 0), (0, lane_w - fan_out))).astype(jnp.float32))

    for i in range(num_layers):
        hw = _matmul_hw(h_cur, padded_ws[i], tm_hw=tm_hw)          # (N, 128) bf16
        h_cur = _spmm_layer(a_bf16, hw, padded_bs[i],
                            is_last=(i == num_layers - 1),
                            num_classes=num_classes, tm=tm, tk=tk)
        # F.dropout(..., training=False) == identity.

    total_loss_enc = jnp.float32(0.0)
    return h_cur[:, :num_classes], total_loss_enc


# ----------------------------------------------------------------------------
# Pure-JAX f32 reference (tolerance check before trusting the kernel)
# ----------------------------------------------------------------------------
def hypergcn_reference(A, H, weights, biases):
    h = H
    for W, b in zip(weights, biases):
        h = jnp.maximum(A @ (h @ W) + b, 0.0)
    return jax.nn.log_softmax(h, axis=1)


# ----------------------------------------------------------------------------
# Deterministic parameter / input construction (synthetic, no checkpoints)
# ----------------------------------------------------------------------------
def build_layer_dims(d, l, c, dataset="cora"):
    """Mirrors HyperGCN.__init__ hidden-width schedule."""
    h = [d]
    for i in range(l - 1):
        power = l - i + 2
        if dataset == "citeseer":
            power = l - i + 4
        h.append(2 ** power)
    h.append(c)
    return h


def build_structure(key, N):
    """Synthetic dense (N, N) symmetric normalized hypergraph Laplacian stand-in
    (the precomputed `structure` used in the args.fast path)."""
    adj = (jax.random.uniform(key, (N, N)) < 0.1).astype(jnp.float32)
    adj = jnp.maximum(adj, adj.T)
    adj = adj + jnp.eye(N, dtype=jnp.float32)          # self loops
    deg = jnp.sum(adj, axis=1)
    d_inv_sqrt = 1.0 / jnp.sqrt(deg)
    return (adj * d_inv_sqrt[:, None] * d_inv_sqrt[None, :]).astype(jnp.float32)


if __name__ == "__main__":
    key = jax.random.PRNGKey(0)
    k_adj, k_feat, *k_params = jax.random.split(key, 8)

    # small, forward-consistent shapes (N chosen so the (i, k) grid has >1 step)
    N = 256        # number of nodes
    d = 32         # args.d  : input feature dim
    l = 2          # args.layer
    c = 8          # args.c  : number of classes
    dims = build_layer_dims(d, l, c)          # -> [32, 16, 8]

    A = build_structure(k_adj, N)                         # (256, 256)
    H = jax.random.normal(k_feat, (N, d), jnp.float32)    # (256, 32)

    weights, biases = [], []
    for i in range(l):
        fan_in, fan_out = dims[i], dims[i + 1]
        scale = 1.0 / jnp.sqrt(jnp.float32(fan_in))
        weights.append(jax.random.uniform(k_params[2 * i], (fan_in, fan_out),
                                          jnp.float32, -scale, scale))
        biases.append(jax.random.uniform(k_params[2 * i + 1], (fan_out,),
                                         jnp.float32, -scale, scale))

    # 128-wide tiles so grid = (2, 2): exercises the k-accumulator init/finalize
    # and the parallel row axis even at this toy size.
    out, total_loss_enc = hypergcn_forward(A, H, tuple(weights), tuple(biases),
                                           tm=128, tk=128, tm_hw=128)
    jax.block_until_ready(out)
    assert out.shape == (N, c)

    # correctness vs f32 reference (inputs/weights are bf16 on the MXU)
    ref = hypergcn_reference(A, H, weights, biases)
    max_err = float(jnp.max(jnp.abs(out - ref)))
    assert max_err < 5e-2, f"max |out - ref| = {max_err}"

    # sanity: log_softmax rows sum to 1 in prob space
    row_sums = jnp.sum(jnp.exp(out), axis=1)
    assert bool(jnp.all(jnp.abs(row_sums - 1.0) < 1e-3))

    print("KERNEL_OK")
</pallas_src>

<mosaic_0001>
module attributes {stable_mosaic.version = 11 : i64} {
  func.func @_hw_kernel(%arg0: i32, %arg1: memref<128x128xbf16, #tpu.memory_space<vmem>>, %arg2: memref<128x128xbf16, #tpu.memory_space<vmem>>, %arg3: memref<128x128xbf16, #tpu.memory_space<vmem>>) attributes {dimension_semantics = [#tpu.dimension_semantics<parallel>], iteration_bounds = array<i64: 2>, scalar_prefetch = 0 : i64, scratch_operands = 0 : i64, tpu.core_type = #tpu.core_type<tc>, window_params = [{transform_indices = @transform_0, window_bounds = array<i64: 128, 128>}, {pipeline_mode = #tpu.pipeline_mode<synchronous>, transform_indices = @transform_1, window_bounds = array<i64: 128, 128>}, {transform_indices = @transform_2, window_bounds = array<i64: 128, 128>}]} {
    %c0 = arith.constant 0 : index
    %c0_0 = arith.constant 0 : index
    %0 = vector.load %arg1[%c0, %c0_0] : memref<128x128xbf16, #tpu.memory_space<vmem>>, vector<128x128xbf16>
    %c0_1 = arith.constant 0 : index
    %c0_2 = arith.constant 0 : index
    %1 = vector.load %arg2[%c0_1, %c0_2] : memref<128x128xbf16, #tpu.memory_space<vmem>>, vector<128x128xbf16>
    %cst = arith.constant dense<0.000000e+00> : vector<128x128xf32>
    %2 = tpu.matmul %0, %1, %cst {dimension_numbers = #tpu.dot_dimension_numbers<[1], [0], [0], [1], [0, 0, 1, 1], [], []>} : vector<128x128xbf16>, vector<128x128xbf16>, vector<128x128xf32> -> vector<128x128xf32>
    %3 = arith.truncf %2 : vector<128x128xf32> to vector<128x128xbf16>
    %c0_3 = arith.constant 0 : index
    %c0_4 = arith.constant 0 : index
    %4 = vector.load %arg3[%c0_3, %c0_4] : memref<128x128xbf16, #tpu.memory_space<vmem>>, vector<128x128xbf16>
    tpu.vector_store %arg3[%c0_3, %c0_4], %3 {strides = array<i32>} : memref<128x128xbf16, #tpu.memory_space<vmem>>, vector<128x128xbf16>,
    return
  }
  func.func @transform_0(%arg0: i32) -> (i32, i32) {
    %c0_i32 = arith.constant 0 : i32
    %c0_i32_0 = arith.constant 0 : i32
    return %arg0, %c0_i32 : i32, i32
  }
  func.func @transform_1(%arg0: i32) -> (i32, i32) {
    %c0_i32 = arith.constant 0 : i32
    %c0_i32_0 = arith.constant 0 : i32
    %c0_i32_1 = arith.constant 0 : i32
    return %c0_i32, %c0_i32_0 : i32, i32
  }
  func.func @transform_2(%arg0: i32) -> (i32, i32) {
    %c0_i32 = arith.constant 0 : i32
    %c0_i32_0 = arith.constant 0 : i32
    return %arg0, %c0_i32 : i32, i32
  }
}

module attributes {stable_mosaic.version = 11 : i64} {
  func.func @kernel(%arg0: i32, %arg1: i32, %arg2: memref<128x128xbf16, #tpu.memory_space<vmem>>, %arg3: memref<128x128xbf16, #tpu.memory_space<vmem>>, %arg4: memref<1x128xf32, #tpu.memory_space<vmem>>, %arg5: memref<128x128xbf16, #tpu.memory_space<vmem>>, %arg6: memref<128x128xf32, #tpu.memory_space<vmem>>) attributes {dimension_semantics = [#tpu.dimension_semantics<parallel>, #tpu.dimension_semantics<arbitrary>], iteration_bounds = array<i64: 2, 2>, scalar_prefetch = 0 : i64, scratch_operands = 1 : i64, tpu.core_type = #tpu.core_type<tc>, window_params = [{transform_indices = @transform_0, window_bounds = array<i64: 128, 128>}, {transform_indices = @transform_1, window_bounds = array<i64: 128, 128>}, {pipeline_mode = #tpu.pipeline_mode<synchronous>, transform_indices = @transform_2, window_bounds = array<i64: 1, 128>}, {transform_indices = @transform_3, window_bounds = array<i64: 128, 128>}]} {
    %c0_i32 = arith.constant 0 : i32
    %0 = arith.cmpi eq, %arg1, %c0_i32 : i32
    %1 = arith.extui %0 : i1 to i32
    %c0_i32_0 = arith.constant 0 : i32
    %2 = arith.cmpi ne, %1, %c0_i32_0 : i32
    scf.if %2 {
      %cst_9 = arith.constant 0.000000e+00 : f32
      %12 = vector.broadcast %cst_9 : f32 to vector<128x128xf32>
      %c0_10 = arith.constant 0 : index
      %c0_11 = arith.constant 0 : index
      %13 = vector.load %arg6[%c0_10, %c0_11] : memref<128x128xf32, #tpu.memory_space<vmem>>, vector<128x128xf32>
      tpu.vector_store %arg6[%c0_10, %c0_11], %12 {strides = array<i32>} : memref<128x128xf32, #tpu.memory_space<vmem>>, vector<128x128xf32>,
    } else {
    }
    %c0 = arith.constant 0 : index
    %c0_1 = arith.constant 0 : index
    %3 = vector.load %arg6[%c0, %c0_1] : memref<128x128xf32, #tpu.memory_space<vmem>>, vector<128x128xf32>
    %c0_2 = arith.constant 0 : index
    %c0_3 = arith.constant 0 : index
    %4 = vector.load %arg2[%c0_2, %c0_3] : memref<128x128xbf16, #tpu.memory_space<vmem>>, vector<128x128xbf16>
    %c0_4 = arith.constant 0 : index
    %c0_5 = arith.constant 0 : index
    %5 = vector.load %arg3[%c0_4, %c0_5] : memref<128x128xbf16, #tpu.memory_space<vmem>>, vector<128x128xbf16>
    %cst = arith.constant dense<0.000000e+00> : vector<128x128xf32>
    %6 = tpu.matmul %4, %5, %cst {dimension_numbers = #tpu.dot_dimension_numbers<[1], [0], [0], [1], [0, 0, 1, 1], [], []>} : vector<128x128xbf16>, vector<128x128xbf16>, vector<128x128xf32> -> vector<128x128xf32>
    %7 = arith.addf %3, %6 : vector<128x128xf32>
    %c0_6 = arith.constant 0 : index
    %c0_7 = arith.constant 0 : index
    %8 = vector.load %arg6[%c0_6, %c0_7] : memref<128x128xf32, #tpu.memory_space<vmem>>, vector<128x128xf32>
    tpu.vector_store %arg6[%c0_6, %c0_7], %7 {strides = array<i32>} : memref<128x128xf32, #tpu.memory_space<vmem>>, vector<128x128xf32>,
    %c1_i32 = arith.constant 1 : i32
    %9 = arith.cmpi eq, %arg1, %c1_i32 : i32
    %10 = arith.extui %9 : i1 to i32
    %c0_i32_8 = arith.constant 0 : i32
    %11 = arith.cmpi ne, %10, %c0_i32_8 : i32
    scf.if %11 {
      %c0_9 = arith.constant 0 : index
      %c0_10 = arith.constant 0 : index
      %12 = vector.load %arg6[%c0_9, %c0_10] : memref<128x128xf32, #tpu.memory_space<vmem>>, vector<128x128xf32>
      %c0_11 = arith.constant 0 : index
      %c0_12 = arith.constant 0 : index
      %13 = vector.load %arg4[%c0_11, %c0_12] : memref<1x128xf32, #tpu.memory_space<vmem>>, vector<1x128xf32>
      %14 = vector.broadcast %13 : vector<1x128xf32> to vector<128x128xf32>
      %15 = arith.addf %12, %14 : vector<128x128xf32>
      %cst_13 = arith.constant 0.000000e+00 : f32
      %16 = vector.broadcast %cst_13 : f32 to vector<128x128xf32>
      %17 = arith.maximumf %15, %16 : vector<128x128xf32>
      %18 = arith.truncf %17 : vector<128x128xf32> to vector<128x128xbf16>
      %c0_14 = arith.constant 0 : index
      %c0_15 = arith.constant 0 : index
      %19 = vector.load %arg5[%c0_14, %c0_15] : memref<128x128xbf16, #tpu.memory_space<vmem>>, vector<128x128xbf16>
      tpu.vector_store %arg5[%c0_14, %c0_15], %18 {strides = array<i32>} : memref<128x128xbf16, #tpu.memory_space<vmem>>, vector<128x128xbf16>,
    } else {
    }
    return
  }
  func.func @transform_0(%arg0: i32, %arg1: i32) -> (i32, i32) {
    %c0_i32 = arith.constant 0 : i32
    return %arg0, %arg1 : i32, i32
  }
  func.func @transform_1(%arg0: i32, %arg1: i32) -> (i32, i32) {
    %c0_i32 = arith.constant 0 : i32
    %c0_i32_0 = arith.constant 0 : i32
    return %arg1, %c0_i32 : i32, i32
  }
  func.func @transform_2(%arg0: i32, %arg1: i32) -> (i32, i32) {
    %c0_i32 = arith.constant 0 : i32
    %c0_i32_0 = arith.constant 0 : i32
    %c0_i32_1 = arith.constant 0 : i32
    return %c0_i32, %c0_i32_0 : i32, i32
  }
  func.func @transform_3(%arg0: i32, %arg1: i32) -> (i32, i32) {
    %c0_i32 = arith.constant 0 : i32
    %c0_i32_0 = arith.constant 0 : i32
    return %arg0, %c0_i32 : i32, i32
  }
}

module attributes {stable_mosaic.version = 11 : i64} {
  func.func @kernel(%arg0: i32, %arg1: i32, %arg2: memref<128x128xbf16, #tpu.memory_space<vmem>>, %arg3: memref<128x128xbf16, #tpu.memory_space<vmem>>, %arg4: memref<1x128xf32, #tpu.memory_space<vmem>>, %arg5: memref<128x128xf32, #tpu.memory_space<vmem>>, %arg6: memref<128x128xf32, #tpu.memory_space<vmem>>) attributes {dimension_semantics = [#tpu.dimension_semantics<parallel>, #tpu.dimension_semantics<arbitrary>], iteration_bounds = array<i64: 2, 2>, scalar_prefetch = 0 : i64, scratch_operands = 1 : i64, tpu.core_type = #tpu.core_type<tc>, window_params = [{transform_indices = @transform_0, window_bounds = array<i64: 128, 128>}, {transform_indices = @transform_1, window_bounds = array<i64: 128, 128>}, {pipeline_mode = #tpu.pipeline_mode<synchronous>, transform_indices = @transform_2, window_bounds = array<i64: 1, 128>}, {transform_indices = @transform_3, window_bounds = array<i64: 128, 128>}]} {
    %c0_i32 = arith.constant 0 : i32
    %0 = arith.cmpi eq, %arg1, %c0_i32 : i32
    %1 = arith.extui %0 : i1 to i32
    %c0_i32_0 = arith.constant 0 : i32
    %2 = arith.cmpi ne, %1, %c0_i32_0 : i32
    scf.if %2 {
      %cst_9 = arith.constant 0.000000e+00 : f32
      %12 = vector.broadcast %cst_9 : f32 to vector<128x128xf32>
      %c0_10 = arith.constant 0 : index
      %c0_11 = arith.constant 0 : index
      %13 = vector.load %arg6[%c0_10, %c0_11] : memref<128x128xf32, #tpu.memory_space<vmem>>, vector<128x128xf32>
      tpu.vector_store %arg6[%c0_10, %c0_11], %12 {strides = array<i32>} : memref<128x128xf32, #tpu.memory_space<vmem>>, vector<128x128xf32>,
    } else {
    }
    %c0 = arith.constant 0 : index
    %c0_1 = arith.constant 0 : index
    %3 = vector.load %arg6[%c0, %c0_1] : memref<128x128xf32, #tpu.memory_space<vmem>>, vector<128x128xf32>
    %c0_2 = arith.constant 0 : index
    %c0_3 = arith.constant 0 : index
    %4 = vector.load %arg2[%c0_2, %c0_3] : memref<128x128xbf16, #tpu.memory_space<vmem>>, vector<128x128xbf16>
    %c0_4 = arith.constant 0 : index
    %c0_5 = arith.constant 0 : index
    %5 = vector.load %arg3[%c0_4, %c0_5] : memref<128x128xbf16, #tpu.memory_space<vmem>>, vector<128x128xbf16>
    %cst = arith.constant dense<0.000000e+00> : vector<128x128xf32>
    %6 = tpu.matmul %4, %5, %cst {dimension_numbers = #tpu.dot_dimension_numbers<[1], [0], [0], [1], [0, 0, 1, 1], [], []>} : vector<128x128xbf16>, vector<128x128xbf16>, vector<128x128xf32> -> vector<128x128xf32>
    %7 = arith.addf %3, %6 : vector<128x128xf32>
    %c0_6 = arith.constant 0 : index
    %c0_7 = arith.constant 0 : index
    %8 = vector.load %arg6[%c0_6, %c0_7] : memref<128x128xf32, #tpu.memory_space<vmem>>, vector<128x128xf32>
    tpu.vector_store %arg6[%c0_6, %c0_7], %7 {strides = array<i32>} : memref<128x128xf32, #tpu.memory_space<vmem>>, vector<128x128xf32>,
    %c1_i32 = arith.constant 1 : i32
    %9 = arith.cmpi eq, %arg1, %c1_i32 : i32
    %10 = arith.extui %9 : i1 to i32
    %c0_i32_8 = arith.constant 0 : i32
    %11 = arith.cmpi ne, %10, %c0_i32_8 : i32
    scf.if %11 {
      %c0_9 = arith.constant 0 : index
      %c0_10 = arith.constant 0 : index
      %12 = vector.load %arg6[%c0_9, %c0_10] : memref<128x128xf32, #tpu.memory_space<vmem>>, vector<128x128xf32>
      %c0_11 = arith.constant 0 : index
      %c0_12 = arith.constant 0 : index
      %13 = vector.load %arg4[%c0_11, %c0_12] : memref<1x128xf32, #tpu.memory_space<vmem>>, vector<1x128xf32>
      %14 = vector.broadcast %13 : vector<1x128xf32> to vector<128x128xf32>
      %15 = arith.addf %12, %14 : vector<128x128xf32>
      %cst_13 = arith.constant 0.000000e+00 : f32
      %16 = vector.broadcast %cst_13 : f32 to vector<128x128xf32>
      %17 = arith.maximumf %15, %16 : vector<128x128xf32>
      %18 = tpu.iota {dimensions = array<i32: 1>} : vector<128x128xi32>
      %c8_i32 = arith.constant 8 : i32
      %19 = vector.broadcast %c8_i32 : i32 to vector<128x128xi32>
      %20 = arith.cmpi slt, %18, %19 : vector<128x128xi32>
      %cst_14 = arith.constant -1.000000e+30 : f32
      %21 = vector.broadcast %cst_14 : f32 to vector<128x128xf32>
      %22 = arith.select %20, %17, %21 : vector<128x128xi1>, vector<128x128xf32>
      %cst_15 = arith.constant dense<0xFF800000> : vector<128xf32>
      %23 = vector.multi_reduction <maximumf>, %22, %cst_15 [1] : vector<128x128xf32> to vector<128xf32>
      %24 = vector.shape_cast %23 : vector<128xf32> to vector<128x1xf32>
      %25 = vector.broadcast %24 : vector<128x1xf32> to vector<128x128xf32>
      %26 = arith.subf %22, %25 : vector<128x128xf32>
      %27 = math.exp %26 : vector<128x128xf32>
      %cst_16 = arith.constant dense<0.000000e+00> : vector<128xf32>
      %28 = vector.multi_reduction <add>, %27, %cst_16 [1] : vector<128x128xf32> to vector<128xf32>
      %29 = vector.shape_cast %28 : vector<128xf32> to vector<128x1xf32>
      %30 = math.log %29 : vector<128x1xf32>
      %31 = vector.broadcast %30 : vector<128x1xf32> to vector<128x128xf32>
      %32 = arith.subf %26, %31 : vector<128x128xf32>
      %c0_17 = arith.constant 0 : index
      %c0_18 = arith.constant 0 : index
      %33 = vector.load %arg5[%c0_17, %c0_18] : memref<128x128xf32, #tpu.memory_space<vmem>>, vector<128x128xf32>
      tpu.vector_store %arg5[%c0_17, %c0_18], %32 {strides = array<i32>} : memref<128x128xf32, #tpu.memory_space<vmem>>, vector<128x128xf32>,
    } else {
    }
    return
  }
  func.func @transform_0(%arg0: i32, %arg1: i32) -> (i32, i32) {
    %c0_i32 = arith.constant 0 : i32
    return %arg0, %arg1 : i32, i32
  }
  func.func @transform_1(%arg0: i32, %arg1: i32) -> (i32, i32) {
    %c0_i32 = arith.constant 0 : i32
    %c0_i32_0 = arith.constant 0 : i32
    return %arg1, %c0_i32 : i32, i32
  }
  func.func @transform_2(%arg0: i32, %arg1: i32) -> (i32, i32) {
    %c0_i32 = arith.constant 0 : i32
    %c0_i32_0 = arith.constant 0 : i32
    %c0_i32_1 = arith.constant 0 : i32
    return %c0_i32, %c0_i32_0 : i32, i32
  }
  func.func @transform_3(%arg0: i32, %arg1: i32) -> (i32, i32) {
    %c0_i32 = arith.constant 0 : i32
    %c0_i32_0 = arith.constant 0 : i32
    return %arg0, %c0_i32 : i32, i32
  }
}

</mosaic_0001>

<bundles_post_ra>
// kernel: hypergcn_forward.4
= control target key start
LH: loop header
LB: loop body
LE: loop exit
PB: predicated region body
PF: predicated region fallthrough
CT: control target
= control target key end

     0   :  { %s726_s9 = smov 0   ;;  %s784_s0 = inlined_call_operand.vmem [shape: bf16[256,128], index: 0, kind: input, shape index: {}]   ;;  %s785_s1 = inlined_call_operand.vmem [shape: bf16[128,128], index: 1, kind: input, shape index: {}]   ;;  %s786_s2 = inlined_call_operand.vmem [shape: bf16[256,128], index: 2, kind: output, shape index: {}]  }
   0x1 LB: > { %s509_s10 = sadd.s32 4294967295, %s709_s9   ;;  %p513_p0 = scmp.ge.s32.totalorder %s709_s9, 1  ;;  %s709_s9 = sphi %s726_s9, %s12_s9  }
   0x2   : > { %p113_p1 = scmp.lt.s32.totalorder %s709_s9, 3 }
   0x4   : > { %p114_p2 = pnand %p513_p0, %p113_p1 }
   0x5   : > { %v687_v0 = vld [vmem:[%s785_s1] sm:$0xff] (!%p114_p2)   ;;  %s514_s13 = sshll.u32 (!%p114_p2), %s509_s10, 4  ;;  %v688_v1 = vld [vmem:[%s785_s1 + $0x8] sm:$0xff] (!%p114_p2)   ;;  %v689_v2 = vld [vmem:[%s785_s1 + $0x10] sm:$0xff] (!%p114_p2)  }
   0x6   : > { %117 = sbr.rel (%p114_p2) target bundleno = 264 (0x108), region = 28  ;;  %p136_p3 = scmp.lt.s32.totalorder (!%p114_p2), %s514_s13, 31  ;;  %631 = vmatprep.subr.bf16.mxu0 (!%p114_p2), %v687_v0  ;;  %663 = vmatprep.subr.bf16.mxu1 (!%p114_p2), %v687_v0  ;;  %v690_v3 = vld [vmem:[%s785_s1 + $0x18] sm:$0xff] (!%p114_p2)   ;;  %v691_v6 = vld [vmem:[%s785_s1 + $0x20] sm:$0xff] (!%p114_p2)   ;;  %v692_v7 = vld [vmem:[%s785_s1 + $0x28] sm:$0xff] (!%p114_p2)  }
   0x7   : > { %632 = vmatpush3.bf16.msra.mxu0 (!%p114_p2), %v687_v0  ;;  %671 = vmatpush3.bf16.msra.mxu1 (!%p114_p2), %v687_v0  ;;  %v693_v8 = vld [vmem:[%s785_s1 + $0x30] sm:$0xff] (!%p114_p2)   ;;  %v694_v9 = vld [vmem:[%s785_s1 + $0x38] sm:$0xff] (!%p114_p2)  }
   0x8   : > { %633 = vmatprep.subr.bf16.mxu0 (!%p114_p2), %v688_v1  ;;  %664 = vmatprep.subr.bf16.mxu1 (!%p114_p2), %v688_v1 }
   0xb   : > { %634 = vmatpush3.bf16.msra.mxu0 (!%p114_p2), %v688_v1  ;;  %672 = vmatpush3.bf16.msra.mxu1 (!%p114_p2), %v688_v1 }
   0xc   : > { %635 = vmatprep.subr.bf16.mxu0 (!%p114_p2), %v689_v2  ;;  %665 = vmatprep.subr.bf16.mxu1 (!%p114_p2), %v689_v2 }
   0xd   : > { %s788_s13 = smov (!%p136_p3, %s514_s13), 31 }
   0xe   : > { %s515_s18 = sshll.u32 %s788_s13, 2 }
   0xf   : > { %s751_s21 = scalar_lea.vmem %s784_s0, %s515_s18  ;;  %636 = vmatpush3.bf16.msra.mxu0 %v689_v2  ;;  %673 = vmatpush3.bf16.msra.mxu1 %v689_v2  ;;  %s145_s6 = scalar_lea.vmem %s786_s2, %s515_s18 }
  0x10   : > { %v695_v4 = vld [vmem:[%s751_s21] sm:$0xff]   ;;  %637 = vmatprep.subr.bf16.mxu0 %v690_v3  ;;  %666 = vmatprep.subr.bf16.mxu1 %v690_v3  ;;  %v697_v10 = vld [vmem:[%s751_s21 + $0x8] sm:$0xff]   ;;  %v699_v12 = vld [vmem:[%s751_s21 + $0x10] sm:$0xff]  }
  0x11   : > { %v696_v5 = vld [vmem:[%s751_s21 + $0x20] sm:$0xff]   ;;  %647 = vmatprep.mubr.bf16.mxu0 %v695_v4  ;;  %v698_v11 = vld [vmem:[%s751_s21 + $0x28] sm:$0xff]   ;;  %v700_v13 = vld [vmem:[%s751_s21 + $0x30] sm:$0xff]  }
  0x12   : > { %655 = vmatprep.mubr.bf16.mxu1 %v696_v5  ;;  %v701_v14 = vld [vmem:[%s751_s21 + $0x18] sm:$0xff]  }
  0x13   : > { %638 = vmatpush3.bf16.msra.mxu0 %v690_v3  ;;  %674 = vmatpush3.bf16.msra.mxu1 %v690_v3  ;;  %v702_v15 = vld [vmem:[%s751_s21 + $0x38] sm:$0xff]  }
  0x14   : > { %639 = vmatprep.subr.bf16.mxu0 %v691_v6  ;;  %667 = vmatprep.subr.bf16.mxu1 %v691_v6 }
  0x17   : > { %640 = vmatpush3.bf16.msra.mxu0 %v691_v6  ;;  %675 = vmatpush3.bf16.msra.mxu1 %v691_v6 }
  0x18   : > { %641 = vmatprep.subr.bf16.mxu0 %v692_v7  ;;  %668 = vmatprep.subr.bf16.mxu1 %v692_v7 }
  0x1b   : > { %642 = vmatpush3.bf16.msra.mxu0 %v692_v7  ;;  %676 = vmatpush3.bf16.msra.mxu1 %v692_v7 }
  0x1c   : > { %643 = vmatprep.subr.bf16.mxu0 %v693_v8  ;;  %669 = vmatprep.subr.bf16.mxu1 %v693_v8 }
  0x1f   : > { %644 = vmatpush3.bf16.msra.mxu0 %v693_v8  ;;  %677 = vmatpush3.bf16.msra.mxu1 %v693_v8 }
  0x20   : > { %645 = vmatprep.subr.bf16.mxu0 %v694_v9  ;;  %670 = vmatprep.subr.bf16.mxu1 %v694_v9 }
  0x23   : > { %646 = vmatpush3.bf16.msra.mxu0 %v694_v9  ;;  %678 = vmatpush3.bf16.msra.mxu1 %v694_v9 }
  0x26   : > { %648 = vmatmul.mubr.bf16.vlgmr.msra.gmra.mrb[0].mxu0 %v697_v10  ;;  %656 = vmatmul.mubr.bf16.vlgmr.msra.gmra.mrb[0].mxu1 %v698_v11 }
  0x27   : > { %651 = vmatprep.mubr.bf16.mxu0 %v699_v12  ;;  %659 = vmatprep.mubr.bf16.mxu1 %v700_v13 }
  0x2e   : > { %652 = vmatmul.mubr.bf16.gmra.mrb[4].mxu0 %v701_v14  ;;  %660 = vmatmul.mubr.bf16.gmra.mrb[4].mxu1 %v702_v15 }
  0xf9   : > { %v649_v16 = vpop.f32.mrb[0].mxu0  ;;  %v657_v17 = vpop.f32.mrb[0].mxu1 }
  0xfa   : > { %v310_v18 = vpop.f32.mrb[1].mxu0  ;;  %v342_v19 = vpop.f32.mrb[1].mxu1 }
  0xfb   : > { %v650_v20 = vpop.f32.mrb[2].mxu0  ;;  %v658_v21 = vpop.f32.mrb[2].mxu1 }
  0xfc   : > { %v576_v22 = vpack.c.bf16 %v650_v20, %v649_v16  ;;  %v596_v23 = vpack.c.bf16 %v658_v21, %v657_v17  ;;  %v313_v24 = vpop.f32.mrb[3].mxu0  ;;  %v345_v25 = vpop.f32.mrb[3].mxu1 }
  0xfd   : > { %v571_v26 = vpack.c.bf16 %v313_v24, %v310_v18  ;;  %v591_v27 = vpack.c.bf16 %v345_v25, %v342_v19 }
  0xfe   : > { %608 = vst [vmem:[%s145_s6 + $0x8] sm:$0xff] %v576_v22   ;;  %612 = vst [vmem:[%s145_s6 + $0x28] sm:$0xff] %v596_v23  }
  0xff   : > { %572 = vst [vmem:[%s145_s6] sm:$0xff] %v571_v26   ;;  %611 = vst [vmem:[%s145_s6 + $0x20] sm:$0xff] %v591_v27  }
 0x101   : > { %v653_v28 = vpop.f32.mrb[4].mxu0  ;;  %v661_v29 = vpop.f32.mrb[4].mxu1 }
 0x102   : > { %v326_v30 = vpop.f32.mrb[5].mxu0  ;;  %v358_v31 = vpop.f32.mrb[5].mxu1 }
 0x103   : > { %v654_v32 = vpop.f32.mrb[6].mxu0  ;;  %v662_v33 = vpop.f32.mrb[6].mxu1 }
 0x104   : > { %v586_v34 = vpack.c.bf16 %v654_v32, %v653_v28  ;;  %v606_v35 = vpack.c.bf16 %v662_v33, %v661_v29  ;;  %v329_v36 = vpop.f32.mrb[7].mxu0  ;;  %v361_v37 = vpop.f32.mrb[7].mxu1 }
 0x105   : > { %v581_v38 = vpack.c.bf16 %v329_v36, %v326_v30  ;;  %v601_v39 = vpack.c.bf16 %v361_v37, %v358_v31 }
 0x106   : > { %610 = vst [vmem:[%s145_s6 + $0x18] sm:$0xff] %v586_v34   ;;  %614 = vst [vmem:[%s145_s6 + $0x38] sm:$0xff] %v606_v35  }
 0x107   : > { %609 = vst [vmem:[%s145_s6 + $0x10] sm:$0xff] %v581_v38   ;;  %613 = vst [vmem:[%s145_s6 + $0x30] sm:$0xff] %v601_v39  }
 0x108 PF: > { %s12_s9 = sadd.s32 1, %s709_s9  }
 0x109   : > { %p9_p4 = scmp.ge.s32.totalorder %s12_s9, 4  }
 0x10b   :  { %11 = sbr.rel (!%p9_p4) target bundleno = 1 (0x1), region = 58 }

// kernel: hypergcn_forward.5
= control target key start
LH: loop header
LB: loop body
LE: loop exit
PB: predicated region body
PF: predicated region fallthrough
CT: control target
= control target key end

     0   :  { %s1163_s12 = smov 0   ;;  %s1165_s13 = smov 0   ;;  %s1308_s0 = inlined_call_operand.vmem [shape: bf16[256,256], index: 0, kind: input, shape index: {}]   ;;  %s1309_s1 = inlined_call_operand.vmem [shape: bf16[256,128], index: 1, kind: input, shape index: {}]   ;;  %s1310_s2 = inlined_call_operand.vmem [shape: f32[1,128], index: 2, kind: input, shape index: {}]   ;;  %s1311_s3 = inlined_call_operand.vmem [shape: bf16[256,128], index: 3, kind: output, shape index: {}]  }
   0x1   :  { %s1167_s14 = smov 0   ;;  %s1169_s15 = smov 0  }
   0x2   :  { %s1171_s16 = smov 0   ;;  %s1173_s17 = smov 0  }
   0x3   :  { %s1175_s18 = smov 0  }
   0x4 LB: > { %s22_s19 = sadd.s32 1, %s1132_s16  ;;  %s25_s20 = sadd.s32 1, %s1136_s17  ;;  %s1140_s18 = sphi %s1175_s18, %s13_s18   ;;  %s1136_s17 = sphi %s1173_s17, %s1317_s17   ;;  %s1132_s16 = sphi %s1171_s16, %s1316_s16   ;;  %s1128_s15 = sphi %s1169_s15, %s1315_s15   ;;  %s1124_s14 = sphi %s1167_s14, %s1314_s14   ;;  %s1120_s13 = sphi %s1165_s13, %s1313_s13   ;;  %s1116_s12 = sphi %s1163_s12, %s1312_s12  }
   0x5   : > { %p23_p0 = scmp.ge.s32.totalorder %s22_s19, 2  ;;  %p41_p1 = scmp.ne.s32.totalorder %s1120_s13, %s1116_s12 }
   0x6   : > { %p42_p2 = scmp.eq.s32.totalorder %s1140_s18, 0  ;;  %s34_s24 = sadd.s32 1, %s1120_s13 }
   0x7   : > { %s1319_s19 = smov (%p23_p0, %s22_s19), 0  ;;  %s1321_s20 = smov (!%p23_p0, %s25_s20), %s1136_s17 }
   0x8   : > { %p43_p3 = por %p42_p2, %p41_p1  ;;  %p27_p4 = scmp.ge.s32.totalorder %s1321_s20, 2 }
   0x9   : > { %s30_s21 = ssub.s32 %s1132_s16, %s1319_s19  ;;  %p837_p6 = scmp.ge.s32.totalorder %s1140_s18, 4 }
   0xa   : > { %s1323_s20 = smov (%p27_p4, %s1321_s20), 0 }
   0xb   : > { %s29_s22 = ssub.s32 %s1136_s17, %s1323_s20  ;;  %143 = sbr.rel (%p837_p6) target bundleno = 34 (0x22), region = 20 }
   0xc   : > { %s31_s23 = sor.u32 %s30_s21, %s29_s22 }
   0xd   : > { %p32_p5 = scmp.eq.s32.totalorder %s31_s23, 0 }
   0xf   : > { %s1214_s25 = scalar_select %p32_p5, %s1120_s13, %s34_s24  }
  0x12   : > { %146 = sbr.rel (!%p43_p3) target bundleno = 34 (0x22), region = 24  ;;  %s148_s26 = sand.u32 (%p43_p3), 1, %s1120_s13  }
  0x13   : > { %s885_s27 = sshll.u32 (%p43_p3), %s1136_s17, 5  ;;  %s838_s28 = sshll.u32 (%p43_p3), %s148_s26, 6 }
  0x14   : > { %s153_s29 = sadd.s32 (%p43_p3), %s1132_s16, %s885_s27  ;;  %s150_s7 = scalar_lea.vmem (%p43_p3), [#allocation3], %s838_s28 }
  0x15   : > { %s841_s30 = sshll.u32 (%p43_p3), %s153_s29, 2 }
  0x16   : > { %s1223_s6 = scalar_lea.vmem (%p43_p3), %s1308_s0, %s841_s30 }
  0x17   : > { %v171_v0 = vld [vmem:[%s1223_s6] sm:$0xf] (%p43_p3)  ;;  %v173_v1 = vld [vmem:[%s1223_s6 + $0x8] sm:$0xf] (%p43_p3)  ;;  %v175_v2 = vld [vmem:[%s1223_s6 + $0x10] sm:$0xf] (%p43_p3) }
  0x18   : > { %172 = vst [vmem:[%s150_s7] sm:$0xf] (%p43_p3), %v171_v0  ;;  %174 = vst [vmem:[%s150_s7 + $0x4] sm:$0xf] (%p43_p3), %v173_v1  ;;  %v177_v3 = vld [vmem:[%s1223_s6 + $0x18] sm:$0xf] (%p43_p3) }
  0x19   : > { %176 = vst [vmem:[%s150_s7 + $0x8] sm:$0xf] %v175_v2  ;;  %v179_v4 = vld [vmem:[%s1223_s6 + $0x20] sm:$0xf]  ;;  %v181_v5 = vld [vmem:[%s1223_s6 + $0x28] sm:$0xf] }
  0x1a   : > { %178 = vst [vmem:[%s150_s7 + $0xc] sm:$0xf] %v177_v3  ;;  %180 = vst [vmem:[%s150_s7 + $0x10] sm:$0xf] %v179_v4  ;;  %v183_v6 = vld [vmem:[%s1223_s6 + $0x30] sm:$0xf] }
  0x1b   : > { %182 = vst [vmem:[%s150_s7 + $0x14] sm:$0xf] %v181_v5  ;;  %v185_v7 = vld [vmem:[%s1223_s6 + $0x38] sm:$0xf]  ;;  %v187_v8 = vld [vmem:[%s1223_s6 + $0x40] sm:$0xf] }
  0x1c   : > { %184 = vst [vmem:[%s150_s7 + $0x18] sm:$0xf] %v183_v6  ;;  %186 = vst [vmem:[%s150_s7 + $0x1c] sm:$0xf] %v185_v7  ;;  %v189_v9 = vld [vmem:[%s1223_s6 + $0x48] sm:$0xf] }
  0x1d   : > { %188 = vst [vmem:[%s150_s7 + $0x20] sm:$0xf] %v187_v8  ;;  %v191_v10 = vld [vmem:[%s1223_s6 + $0x50] sm:$0xf]  ;;  %v193_v11 = vld [vmem:[%s1223_s6 + $0x58] sm:$0xf] }
  0x1e   : > { %190 = vst [vmem:[%s150_s7 + $0x24] sm:$0xf] %v189_v9  ;;  %192 = vst [vmem:[%s150_s7 + $0x28] sm:$0xf] %v191_v10  ;;  %v195_v12 = vld [vmem:[%s1223_s6 + $0x60] sm:$0xf] }
  0x1f   : > { %194 = vst [vmem:[%s150_s7 + $0x2c] sm:$0xf] %v193_v11  ;;  %v197_v13 = vld [vmem:[%s1223_s6 + $0x68] sm:$0xf]  ;;  %v199_v14 = vld [vmem:[%s1223_s6 + $0x70] sm:$0xf] }
  0x20   : > { %196 = vst [vmem:[%s150_s7 + $0x30] sm:$0xf] %v195_v12  ;;  %198 = vst [vmem:[%s150_s7 + $0x34] sm:$0xf] %v197_v13  ;;  %v201_v15 = vld [vmem:[%s1223_s6 + $0x78] sm:$0xf] }
  0x21   : > { %200 = vst [vmem:[%s150_s7 + $0x38] sm:$0xf] %v199_v14  ;;  %202 = vst [vmem:[%s150_s7 + $0x3c] sm:$0xf] %v201_v15 }
  0x22 PF: > { %p842_p7 = scmp.ge.s32.totalorder %s1140_s18, 1  ;;  %p265_p8 = scmp.lt.s32.totalorder %s1140_s18, 5 }
  0x24   : > { %p266_p9 = pnand %p842_p7, %p265_p8 }
  0x25   : > { %s272_s8 = sand.u32 (!%p266_p9), 1, %s1116_s12   ;;  %s844_s9 = sshll.u32 (!%p266_p9), %s1124_s14, 4 }
  0x26   : > { %269 = sbr.rel (%p266_p9) target bundleno = 329 (0x149), region = 69  ;;  %s843_s10 = sshll.u32 (!%p266_p9), %s272_s8, 6 }
  0x27   : > { %p302_p10 = scmp.lt.s32.totalorder (!%p266_p9), %s844_s9, 31  ;;  %s846_s11 = sshll.u32 (!%p266_p9), %s1128_s15, 4 }
  0x28   : > { %p308_p11 = scmp.lt.s32.totalorder (!%p266_p9), %s846_s11, 31  ;;  %s1256_s12 = scalar_lea.vmem (!%p266_p9), [#allocation3], %s843_s10 }
  0x29   : > { %p848_p12 = scmp.ne.s32.totalorder (!%p266_p9), %s1124_s14, 0 }
  0x2d   : > { %s1325_s9 = smov (!%p302_p10, %s844_s9), 31  ;;  %s1327_s11 = smov (!%p308_p11, %s846_s11), 31 }
  0x2e   : > { %s845_s21 = sshll.u32 %s1325_s9, 2  ;;  %s847_s26 = sshll.u32 %s1327_s11, 2  ;;  %v1142_v16 = vmov (!%p848_p12), 0.0  }
  0x2f   : > { %s1249_s24 = scalar_lea.vmem %s1309_s1, %s845_s21  ;;  %s1254_s29 = scalar_lea.vmem %s1311_s3, %s847_s26  ;;  %318 = vst [vmem:[#allocation2] sm:$0xff] (!%p848_p12), %v1142_v16  ;;  %319 = vst [vmem:[#allocation2 + $0x8] sm:$0xff] (!%p848_p12), %v1142_v16 }
  0x30   : > { %317 = sbr.rel (%p848_p12) target bundleno = 55 (0x37), region = 77  ;;  %320 = vst [vmem:[#allocation2 + $0x10] sm:$0xff] (!%p848_p12), %v1142_v16  ;;  %321 = vst [vmem:[#allocation2 + $0x18] sm:$0xff] (!%p848_p12), %v1142_v16 }
  0x31   : > { %322 = vst [vmem:[#allocation2 + $0x20] sm:$0xff] (!%p848_p12), %v1142_v16  ;;  %323 = vst [vmem:[#allocation2 + $0x28] sm:$0xff] (!%p848_p12), %v1142_v16 }
  0x32   : > { %324 = vst [vmem:[#allocation2 + $0x30] sm:$0xff] (!%p848_p12), %v1142_v16  ;;  %325 = vst [vmem:[#allocation2 + $0x38] sm:$0xff] (!%p848_p12), %v1142_v16 }
  0x33   : > { %326 = vst [vmem:[#allocation2 + $0x40] sm:$0xff] (!%p848_p12), %v1142_v16  ;;  %327 = vst [vmem:[#allocation2 + $0x48] sm:$0xff] (!%p848_p12), %v1142_v16 }
  0x34   : > { %328 = vst [vmem:[#allocation2 + $0x50] sm:$0xff] (!%p848_p12), %v1142_v16  ;;  %329 = vst [vmem:[#allocation2 + $0x58] sm:$0xff] (!%p848_p12), %v1142_v16 }
  0x35   : > { %330 = vst [vmem:[#allocation2 + $0x60] sm:$0xff] (!%p848_p12), %v1142_v16  ;;  %331 = vst [vmem:[#allocation2 + $0x68] sm:$0xff] (!%p848_p12), %v1142_v16 }
  0x36   : > { %332 = vst [vmem:[#allocation2 + $0x70] sm:$0xff] (!%p848_p12), %v1142_v16  ;;  %333 = vst [vmem:[#allocation2 + $0x78] sm:$0xff] (!%p848_p12), %v1142_v16 }
  0x37 PF: > { %v1070_v17 = vld [vmem:[%s1249_s24] sm:$0xff]   ;;  %v1071_v18 = vld [vmem:[%s1249_s24 + $0x8] sm:$0xff]   ;;  %v1072_v19 = vld [vmem:[%s1249_s24 + $0x10] sm:$0xff]   ;;  %p865_p13 = scmp.ne.s32.totalorder %s1124_s14, 1 }
  0x38   : > { %965 = vmatprep.subr.bf16.mxu0 %v1070_v17  ;;  %997 = vmatprep.subr.bf16.mxu1 %v1070_v17  ;;  %v1073_v20 = vld [vmem:[%s1249_s24 + $0x18] sm:$0xff]   ;;  %v1078_v21 = vld [vmem:[%s1256_s12] sm:$0xff]   ;;  %v1075_v24 = vld [vmem:[%s1249_s24 + $0x28] sm:$0xff]  }
  0x39   : > { %966 = vmatpush3.bf16.msra.mxu0 %v1070_v17  ;;  %1005 = vmatpush3.bf16.msra.mxu1 %v1070_v17  ;;  %v1079_v22 = vld [vmem:[%s1256_s12 + $0x20] sm:$0xff]   ;;  %v1076_v25 = vld [vmem:[%s1249_s24 + $0x30] sm:$0xff]   ;;  %v1077_v26 = vld [vmem:[%s1249_s24 + $0x38] sm:$0xff]  }
  0x3a   : > { %967 = vmatprep.subr.bf16.mxu0 %v1071_v18  ;;  %998 = vmatprep.subr.bf16.mxu1 %v1071_v18  ;;  %v1074_v23 = vld [vmem:[%s1249_s24 + $0x20] sm:$0xff]   ;;  %v1080_v27 = vld [vmem:[%s1256_s12 + $0x8] sm:$0xff]   ;;  %v1082_v29 = vld [vmem:[%s1256_s12 + $0x10] sm:$0xff]  }
  0x3b   : > { %981 = vmatprep.mubr.bf16.mxu0 %v1078_v21  ;;  %989 = vmatprep.mubr.bf16.mxu1 %v1079_v22  ;;  %v1081_v28 = vld [vmem:[%s1256_s12 + $0x28] sm:$0xff]   ;;  %v1083_v30 = vld [vmem:[%s1256_s12 + $0x30] sm:$0xff]   ;;  %v1084_v31 = vld [vmem:[%s1256_s12 + $0x18] sm:$0xff]  }
  0x3c   : > { %v1085_v32 = vld [vmem:[%s1256_s12 + $0x38] sm:$0xff]   ;;  %v336_v33 = vld [vmem:[#allocation2 + $0x10] sm:$0xff]  ;;  %v334_v35 = vld [vmem:[#allocation2] sm:$0xff] }
  0x3d   : > { %968 = vmatpush3.bf16.msra.mxu0 %v1071_v18  ;;  %1006 = vmatpush3.bf16.msra.mxu1 %v1071_v18  ;;  %v344_v34 = vld [vmem:[#allocation2 + $0x50] sm:$0xff]  ;;  %v342_v36 = vld [vmem:[#allocation2 + $0x40] sm:$0xff]  ;;  %v337_v39 = vld [vmem:[#allocation2 + $0x18] sm:$0xff] }
  0x3e   : > { %969 = vmatprep.subr.bf16.mxu0 %v1072_v19  ;;  %999 = vmatprep.subr.bf16.mxu1 %v1072_v19  ;;  %v345_v40 = vld [vmem:[#allocation2 + $0x58] sm:$0xff]  ;;  %v335_v45 = vld [vmem:[#allocation2 + $0x8] sm:$0xff]  ;;  %v340_v57 = vld [vmem:[#allocation2 + $0x30] sm:$0xff] }
  0x3f   : > { %v343_v46 = vld [vmem:[#allocation2 + $0x48] sm:$0xff]  ;;  %v348_v58 = vld [vmem:[#allocation2 + $0x70] sm:$0xff]  ;;  %v338_v59 = vld [vmem:[#allocation2 + $0x20] sm:$0xff] }
  0x40   : > { %v346_v60 = vld [vmem:[#allocation2 + $0x60] sm:$0xff]  ;;  %v341_v63 = vld [vmem:[#allocation2 + $0x38] sm:$0xff]  ;;  %v339_v5 = vld [vmem:[#allocation2 + $0x28] sm:$0xff] }
  0x41   : > { %970 = vmatpush3.bf16.msra.mxu0 %v1072_v19  ;;  %1007 = vmatpush3.bf16.msra.mxu1 %v1072_v19  ;;  %v349_v0 = vld [vmem:[#allocation2 + $0x78] sm:$0xff]  ;;  %v347_v6 = vld [vmem:[#allocation2 + $0x68] sm:$0xff]  ;;  %v866_v19 = vld [vmem:[%s1310_s2] ss:$0 sm:$0xff] (!%p865_p13) }
  0x42   : > { %971 = vmatprep.subr.bf16.mxu0 %v1073_v20  ;;  %1000 = vmatprep.subr.bf16.mxu1 %v1073_v20 }
  0x45   : > { %972 = vmatpush3.bf16.msra.mxu0 %v1073_v20  ;;  %1008 = vmatpush3.bf16.msra.mxu1 %v1073_v20 }
  0x46   : > { %973 = vmatprep.subr.bf16.mxu0 %v1074_v23  ;;  %1001 = vmatprep.subr.bf16.mxu1 %v1074_v23 }
  0x49   : > { %974 = vmatpush3.bf16.msra.mxu0 %v1074_v23  ;;  %1009 = vmatpush3.bf16.msra.mxu1 %v1074_v23 }
  0x4a   : > { %975 = vmatprep.subr.bf16.mxu0 %v1075_v24  ;;  %1002 = vmatprep.subr.bf16.mxu1 %v1075_v24 }
  0x4d   : > { %976 = vmatpush3.bf16.msra.mxu0 %v1075_v24  ;;  %1010 = vmatpush3.bf16.msra.mxu1 %v1075_v24 }
  0x4e   : > { %977 = vmatprep.subr.bf16.mxu0 %v1076_v25  ;;  %1003 = vmatprep.subr.bf16.mxu1 %v1076_v25 }
  0x51   : > { %978 = vmatpush3.bf16.msra.mxu0 %v1076_v25  ;;  %1011 = vmatpush3.bf16.msra.mxu1 %v1076_v25 }
  0x52   : > { %979 = vmatprep.subr.bf16.mxu0 %v1077_v26  ;;  %1004 = vmatprep.subr.bf16.mxu1 %v1077_v26 }
  0x55   : > { %980 = vmatpush3.bf16.msra.mxu0 %v1077_v26  ;;  %1012 = vmatpush3.bf16.msra.mxu1 %v1077_v26 }
  0x58   : > { %982 = vmatmul.mubr.bf16.vlgmr.msra.gmra.mrb[0].mxu0 %v1080_v27  ;;  %990 = vmatmul.mubr.bf16.vlgmr.msra.gmra.mrb[0].mxu1 %v1081_v28 }
  0x59   : > { %985 = vmatprep.mubr.bf16.mxu0 %v1082_v29  ;;  %993 = vmatprep.mubr.bf16.mxu1 %v1083_v30 }
  0x60   : > { %986 = vmatmul.mubr.bf16.gmra.mrb[4].mxu0 %v1084_v31  ;;  %994 = vmatmul.mubr.bf16.gmra.mrb[4].mxu1 %v1085_v32 }
 0x12b   : > { %v983_v37 = vpop.f32.mrb[0].mxu0  ;;  %v991_v38 = vpop.f32.mrb[0].mxu1 }
 0x12c   : > { %v577_v41 = vadd.f32 %v983_v37, %v336_v33  ;;  %v585_v42 = vadd.f32 %v991_v38, %v344_v34  ;;  %v512_v43 = vpop.f32.mrb[1].mxu0  ;;  %v544_v44 = vpop.f32.mrb[1].mxu1 }
 0x12d   : > { %v575_v47 = vadd.f32 %v512_v43, %v334_v35  ;;  %v583_v48 = vadd.f32 %v544_v44, %v342_v36  ;;  %v984_v49 = vpop.f32.mrb[2].mxu0  ;;  %v992_v50 = vpop.f32.mrb[2].mxu1 }
 0x12e   : > { %593 = vst [vmem:[#allocation2 + $0x10] sm:$0xff] %v577_v41  ;;  %601 = vst [vmem:[#allocation2 + $0x50] sm:$0xff] %v585_v42  ;;  %v578_v51 = vadd.f32 %v984_v49, %v337_v39  ;;  %v586_v52 = vadd.f32 %v992_v50, %v345_v40  ;;  %v515_v53 = vpop.f32.mrb[3].mxu0  ;;  %v547_v54 = vpop.f32.mrb[3].mxu1 }
 0x12f   : > { %591 = vst [vmem:[#allocation2] sm:$0xff] %v575_v47  ;;  %599 = vst [vmem:[#allocation2 + $0x40] sm:$0xff] %v583_v48  ;;  %v576_v55 = vadd.f32 %v515_v53, %v335_v45  ;;  %v584_v56 = vadd.f32 %v547_v54, %v343_v46 }
 0x130   : > { %594 = vst [vmem:[#allocation2 + $0x18] sm:$0xff] %v578_v51  ;;  %602 = vst [vmem:[#allocation2 + $0x58] sm:$0xff] %v586_v52 }
 0x131   : > { %592 = vst [vmem:[#allocation2 + $0x8] sm:$0xff] %v576_v55  ;;  %600 = vst [vmem:[#allocation2 + $0x48] sm:$0xff] %v584_v56 }
 0x133   : > { %v987_v61 = vpop.f32.mrb[4].mxu0  ;;  %v995_v62 = vpop.f32.mrb[4].mxu1  ;;  %610 = sbr.rel (%p865_p13) target bundleno = 329 (0x149), region = 81 }
 0x134   : > { %v581_v1 = vadd.f32 %v987_v61, %v340_v57  ;;  %v589_v2 = vadd.f32 %v995_v62, %v348_v58  ;;  %v528_v3 = vpop.f32.mrb[5].mxu0  ;;  %v560_v4 = vpop.f32.mrb[5].mxu1 }
 0x135   : > { %v579_v7 = vadd.f32 %v528_v3, %v338_v59  ;;  %v587_v8 = vadd.f32 %v560_v4, %v346_v60  ;;  %v988_v9 = vpop.f32.mrb[6].mxu0  ;;  %v996_v10 = vpop.f32.mrb[6].mxu1  ;;  %v613_v22 = vld [vmem:[#allocation2 + $0x10] sm:$0xff] (!%p865_p13) }
 0x136   : > { %597 = vst [vmem:[#allocation2 + $0x30] sm:$0xff] %v581_v1  ;;  %605 = vst [vmem:[#allocation2 + $0x70] sm:$0xff] %v589_v2  ;;  %v582_v11 = vadd.f32 %v988_v9, %v341_v63  ;;  %v590_v12 = vadd.f32 %v996_v10, %v349_v0  ;;  %v531_v13 = vpop.f32.mrb[7].mxu0  ;;  %v563_v14 = vpop.f32.mrb[7].mxu1  ;;  %v611_v17 = vld [vmem:[#allocation2] sm:$0xff] (!%p865_p13)  ;;  %v636_v25 = vadd.f32 (!%p865_p13), %v866_v19, %v613_v22  ;;  %v621_v37 = vld [vmem:[#allocation2 + $0x50] sm:$0xff] (!%p865_p13) }
 0x137   : > { %595 = vst [vmem:[#allocation2 + $0x20] sm:$0xff] %v579_v7  ;;  %603 = vst [vmem:[#allocation2 + $0x60] sm:$0xff] %v587_v8  ;;  %v580_v15 = vadd.f32 %v531_v13, %v339_v5  ;;  %v588_v16 = vadd.f32 %v563_v14, %v347_v6  ;;  %v634_v20 = vadd.f32 (!%p865_p13), %v866_v19, %v611_v17  ;;  %v614_v23 = vld [vmem:[#allocation2 + $0x18] sm:$0xff] (!%p865_p13)  ;;  %v619_v35 = vld [vmem:[#allocation2 + $0x40] sm:$0xff] (!%p865_p13) }
 0x138   : > { %598 = vst [vmem:[#allocation2 + $0x38] sm:$0xff] %v582_v11  ;;  %606 = vst [vmem:[#allocation2 + $0x78] sm:$0xff] %v590_v12  ;;  %v612_v18 = vld [vmem:[#allocation2 + $0x8] sm:$0xff] (!%p865_p13)  ;;  %v637_v26 = vadd.f32 (!%p865_p13), %v866_v19, %v614_v23  ;;  %v652_v38 = vmax.f32 (!%p865_p13), %v636_v25, 0.0  ;;  %v622_v42 = vld [vmem:[#allocation2 + $0x58] sm:$0xff] (!%p865_p13)  ;;  %v642_v47 = vadd.f32 (!%p865_p13), %v866_v19, %v619_v35  ;;  %v644_v52 = vadd.f32 (!%p865_p13), %v866_v19, %v621_v37 }
 0x139   : > { %596 = vst [vmem:[#allocation2 + $0x28] sm:$0xff] %v580_v15  ;;  %604 = vst [vmem:[#allocation2 + $0x68] sm:$0xff] %v588_v16  ;;  %v635_v21 = vadd.f32 (!%p865_p13), %v866_v19, %v612_v18  ;;  %v650_v31 = vmax.f32 (!%p865_p13), %v634_v20, 0.0  ;;  %v620_v36 = vld [vmem:[#allocation2 + $0x48] sm:$0xff] (!%p865_p13)  ;;  %v645_v57 = vadd.f32 (!%p865_p13), %v866_v19, %v622_v42 }
 0x13a   : > { %v653_v39 = vmax.f32 %v637_v26, 0.0  ;;  %v643_v51 = vadd.f32 %v866_v19, %v620_v36  ;;  %v658_v56 = vmax.f32 %v642_v47, 0.0  ;;  %v660_v61 = vmax.f32 %v644_v52, 0.0 }
 0x13b   : > { %v651_v32 = vmax.f32 %v635_v21, 0.0  ;;  %v661_v63 = vmax.f32 %v645_v57, 0.0 }
 0x13c   : > { %v910_v49 = vpack.c.bf16 %v653_v39, %v652_v38  ;;  %v659_v60 = vmax.f32 %v643_v51, 0.0 }
 0x13d   : > { %v617_v29 = vld [vmem:[#allocation2 + $0x30] sm:$0xff]  ;;  %v905_v44 = vpack.c.bf16 %v651_v32, %v650_v31  ;;  %v930_v5 = vpack.c.bf16 %v661_v63, %v660_v61 }
 0x13e   : > { %v615_v24 = vld [vmem:[#allocation2 + $0x20] sm:$0xff]  ;;  %v640_v34 = vadd.f32 %v866_v19, %v617_v29  ;;  %v625_v53 = vld [vmem:[#allocation2 + $0x70] sm:$0xff]  ;;  %942 = vst [vmem:[%s1254_s29 + $0x8] sm:$0xff] %v910_v49   ;;  %v925_v3 = vpack.c.bf16 %v659_v60, %v658_v56 }
 0x13f   : > { %v638_v28 = vadd.f32 %v866_v19, %v615_v24  ;;  %v618_v30 = vld [vmem:[#allocation2 + $0x38] sm:$0xff]  ;;  %v623_v43 = vld [vmem:[#allocation2 + $0x60] sm:$0xff]  ;;  %906 = vst [vmem:[%s1254_s29] sm:$0xff] %v905_v44   ;;  %v648_v1 = vadd.f32 %v866_v19, %v625_v53  ;;  %946 = vst [vmem:[%s1254_s29 + $0x28] sm:$0xff] %v930_v5  }
 0x140   : > { %v616_v27 = vld [vmem:[#allocation2 + $0x28] sm:$0xff]  ;;  %v641_v41 = vadd.f32 %v866_v19, %v618_v30  ;;  %v656_v46 = vmax.f32 %v640_v34, 0.0  ;;  %v626_v54 = vld [vmem:[#allocation2 + $0x78] sm:$0xff]  ;;  %v646_v58 = vadd.f32 %v866_v19, %v623_v43  ;;  %945 = vst [vmem:[%s1254_s29 + $0x20] sm:$0xff] %v925_v3  }
 0x141   : > { %v639_v33 = vadd.f32 %v866_v19, %v616_v27  ;;  %v654_v40 = vmax.f32 %v638_v28, 0.0  ;;  %v624_v48 = vld [vmem:[#allocation2 + $0x68] sm:$0xff]  ;;  %v649_v2 = vadd.f32 %v866_v19, %v626_v54  ;;  %v664_v6 = vmax.f32 %v648_v1, 0.0 }
 0x142   : > { %v657_v50 = vmax.f32 %v641_v41, 0.0  ;;  %v647_v62 = vadd.f32 %v866_v19, %v624_v48  ;;  %v662_v0 = vmax.f32 %v646_v58, 0.0 }
 0x143   : > { %v655_v45 = vmax.f32 %v639_v33, 0.0  ;;  %v665_v7 = vmax.f32 %v649_v2, 0.0 }
 0x144   : > { %v920_v59 = vpack.c.bf16 %v657_v50, %v656_v46  ;;  %v663_v4 = vmax.f32 %v647_v62, 0.0 }
 0x145   : > { %v915_v55 = vpack.c.bf16 %v655_v45, %v654_v40  ;;  %v940_v9 = vpack.c.bf16 %v665_v7, %v664_v6 }
 0x146   : > { %944 = vst [vmem:[%s1254_s29 + $0x18] sm:$0xff] %v920_v59   ;;  %v935_v8 = vpack.c.bf16 %v663_v4, %v662_v0 }
 0x147   : > { %943 = vst [vmem:[%s1254_s29 + $0x10] sm:$0xff] %v915_v55   ;;  %948 = vst [vmem:[%s1254_s29 + $0x38] sm:$0xff] %v940_v9  }
 0x148   : > { %947 = vst [vmem:[%s1254_s29 + $0x30] sm:$0xff] %v935_v8  }
 0x149 PF: > { %s13_s18 = sadd.s32 1, %s1140_s18   ;;  %s1312_s12 = smov %s1120_s13 }
 0x14a   : > { %p10_p0 = scmp.ge.s32.totalorder %s13_s18, 6   ;;  %s1313_s13 = smov %s1214_s25 }
 0x14b   : > { %s1314_s14 = smov %s1132_s16  ;;  %s1315_s15 = smov %s1136_s17 }
 0x14c   : > { %s1316_s16 = smov %s1319_s19  ;;  %s1317_s17 = smov %s1323_s20 }
 0x14d   :  { %12 = sbr.rel (!%p10_p0) target bundleno = 4 (0x4), region = 119 }

// kernel: hypergcn_forward.7
= control target key start
LH: loop header
LB: loop body
LE: loop exit
PB: predicated region body
PF: predicated region fallthrough
CT: control target
= control target key end

     0   :  { %s1263_s12 = smov 0   ;;  %s1265_s13 = smov 0   ;;  %s1585_s0 = inlined_call_operand.vmem [shape: bf16[256,256], index: 0, kind: input, shape index: {}]   ;;  %s1586_s1 = inlined_call_operand.vmem [shape: bf16[256,128], index: 1, kind: input, shape index: {}]   ;;  %s1587_s2 = inlined_call_operand.vmem [shape: f32[1,128], index: 2, kind: input, shape index: {}]   ;;  %s1588_s3 = inlined_call_operand.vmem [shape: f32[256,128], index: 3, kind: output, shape index: {}]  }
   0x1   :  { %s1267_s14 = smov 0   ;;  %s1269_s15 = smov 0  }
   0x2   :  { %s1271_s16 = smov 0   ;;  %s1273_s17 = smov 0  }
   0x3   :  { %s1275_s18 = smov 0  }
   0x4 LB: > { %s22_s19 = sadd.s32 1, %s1232_s16  ;;  %s25_s20 = sadd.s32 1, %s1236_s17  ;;  %s1240_s18 = sphi %s1275_s18, %s13_s18   ;;  %s1236_s17 = sphi %s1273_s17, %s1594_s17   ;;  %s1232_s16 = sphi %s1271_s16, %s1593_s16   ;;  %s1228_s15 = sphi %s1269_s15, %s1592_s15   ;;  %s1224_s14 = sphi %s1267_s14, %s1591_s14   ;;  %s1220_s13 = sphi %s1265_s13, %s1590_s13   ;;  %s1216_s12 = sphi %s1263_s12, %s1589_s12  }
   0x5   : > { %p23_p0 = scmp.ge.s32.totalorder %s22_s19, 2  ;;  %p41_p1 = scmp.ne.s32.totalorder %s1220_s13, %s1216_s12 }
   0x6   : > { %p42_p2 = scmp.eq.s32.totalorder %s1240_s18, 0  ;;  %s34_s24 = sadd.s32 1, %s1220_s13 }
   0x7   : > { %s1596_s19 = smov (%p23_p0, %s22_s19), 0  ;;  %s1598_s20 = smov (!%p23_p0, %s25_s20), %s1236_s17 }
   0x8   : > { %p43_p3 = por %p42_p2, %p41_p1  ;;  %p27_p4 = scmp.ge.s32.totalorder %s1598_s20, 2 }
   0x9   : > { %s30_s21 = ssub.s32 %s1232_s16, %s1596_s19  ;;  %p952_p6 = scmp.ge.s32.totalorder %s1240_s18, 4 }
   0xa   : > { %s1600_s20 = smov (%p27_p4, %s1598_s20), 0 }
   0xb   : > { %s29_s22 = ssub.s32 %s1236_s17, %s1600_s20  ;;  %143 = sbr.rel (%p952_p6) target bundleno = 34 (0x22), region = 20 }
   0xc   : > { %s31_s23 = sor.u32 %s30_s21, %s29_s22 }
   0xd   : > { %p32_p5 = scmp.eq.s32.totalorder %s31_s23, 0 }
   0xf   : > { %s1314_s25 = scalar_select %p32_p5, %s1220_s13, %s34_s24  }
  0x12   : > { %146 = sbr.rel (!%p43_p3) target bundleno = 34 (0x22), region = 24  ;;  %s148_s26 = sand.u32 (%p43_p3), 1, %s1220_s13  }
  0x13   : > { %s984_s27 = sshll.u32 (%p43_p3), %s1236_s17, 5  ;;  %s953_s28 = sshll.u32 (%p43_p3), %s148_s26, 6 }
  0x14   : > { %s153_s29 = sadd.s32 (%p43_p3), %s1232_s16, %s984_s27  ;;  %s150_s7 = scalar_lea.vmem (%p43_p3), [#allocation3], %s953_s28 }
  0x15   : > { %s956_s30 = sshll.u32 (%p43_p3), %s153_s29, 2 }
  0x16   : > { %s1323_s6 = scalar_lea.vmem (%p43_p3), %s1585_s0, %s956_s30 }
  0x17   : > { %v171_v0 = vld [vmem:[%s1323_s6] sm:$0xf] (%p43_p3)  ;;  %v173_v1 = vld [vmem:[%s1323_s6 + $0x8] sm:$0xf] (%p43_p3)  ;;  %v175_v2 = vld [vmem:[%s1323_s6 + $0x10] sm:$0xf] (%p43_p3) }
  0x18   : > { %172 = vst [vmem:[%s150_s7] sm:$0xf] (%p43_p3), %v171_v0  ;;  %174 = vst [vmem:[%s150_s7 + $0x4] sm:$0xf] (%p43_p3), %v173_v1  ;;  %v177_v3 = vld [vmem:[%s1323_s6 + $0x18] sm:$0xf] (%p43_p3) }
  0x19   : > { %176 = vst [vmem:[%s150_s7 + $0x8] sm:$0xf] %v175_v2  ;;  %v179_v4 = vld [vmem:[%s1323_s6 + $0x20] sm:$0xf]  ;;  %v181_v5 = vld [vmem:[%s1323_s6 + $0x28] sm:$0xf] }
  0x1a   : > { %178 = vst [vmem:[%s150_s7 + $0xc] sm:$0xf] %v177_v3  ;;  %180 = vst [vmem:[%s150_s7 + $0x10] sm:$0xf] %v179_v4  ;;  %v183_v6 = vld [vmem:[%s1323_s6 + $0x30] sm:$0xf] }
  0x1b   : > { %182 = vst [vmem:[%s150_s7 + $0x14] sm:$0xf] %v181_v5  ;;  %v185_v7 = vld [vmem:[%s1323_s6 + $0x38] sm:$0xf]  ;;  %v187_v8 = vld [vmem:[%s1323_s6 + $0x40] sm:$0xf] }
  0x1c   : > { %184 = vst [vmem:[%s150_s7 + $0x18] sm:$0xf] %v183_v6  ;;  %186 = vst [vmem:[%s150_s7 + $0x1c] sm:$0xf] %v185_v7  ;;  %v189_v9 = vld [vmem:[%s1323_s6 + $0x48] sm:$0xf] }
  0x1d   : > { %188 = vst [vmem:[%s150_s7 + $0x20] sm:$0xf] %v187_v8  ;;  %v191_v10 = vld [vmem:[%s1323_s6 + $0x50] sm:$0xf]  ;;  %v193_v11 = vld [vmem:[%s1323_s6 + $0x58] sm:$0xf] }
  0x1e   : > { %190 = vst [vmem:[%s150_s7 + $0x24] sm:$0xf] %v189_v9  ;;  %192 = vst [vmem:[%s150_s7 + $0x28] sm:$0xf] %v191_v10  ;;  %v195_v12 = vld [vmem:[%s1323_s6 + $0x60] sm:$0xf] }
  0x1f   : > { %194 = vst [vmem:[%s150_s7 + $0x2c] sm:$0xf] %v193_v11  ;;  %v197_v13 = vld [vmem:[%s1323_s6 + $0x68] sm:$0xf]  ;;  %v199_v14 = vld [vmem:[%s1323_s6 + $0x70] sm:$0xf] }
  0x20   : > { %196 = vst [vmem:[%s150_s7 + $0x30] sm:$0xf] %v195_v12  ;;  %198 = vst [vmem:[%s150_s7 + $0x34] sm:$0xf] %v197_v13  ;;  %v201_v15 = vld [vmem:[%s1323_s6 + $0x78] sm:$0xf] }
  0x21   : > { %200 = vst [vmem:[%s150_s7 + $0x38] sm:$0xf] %v199_v14  ;;  %202 = vst [vmem:[%s150_s7 + $0x3c] sm:$0xf] %v201_v15 }
  0x22 PF: > { %p957_p7 = scmp.ge.s32.totalorder %s1240_s18, 1  ;;  %p265_p8 = scmp.lt.s32.totalorder %s1240_s18, 5 }
  0x24   : > { %p266_p9 = pnand %p957_p7, %p265_p8 }
  0x25   : > { %s272_s8 = sand.u32 (!%p266_p9), 1, %s1216_s12   ;;  %s959_s9 = sshll.u32 (!%p266_p9), %s1224_s14, 4 }
  0x26   : > { %269 = sbr.rel (%p266_p9) target bundleno = 663 (0x297), region = 69  ;;  %s958_s10 = sshll.u32 (!%p266_p9), %s272_s8, 6 }
  0x27   : > { %p302_p10 = scmp.lt.s32.totalorder (!%p266_p9), %s959_s9, 31  ;;  %s961_s11 = sshll.u32 (!%p266_p9), %s1228_s15, 4 }
  0x28   : > { %p308_p11 = scmp.lt.s32.totalorder (!%p266_p9), %s961_s11, 31  ;;  %s1356_s12 = scalar_lea.vmem (!%p266_p9), [#allocation3], %s958_s10 }
  0x29   : > { %p963_p12 = scmp.ne.s32.totalorder (!%p266_p9), %s1224_s14, 0 }
  0x2d   : > { %s1602_s9 = smov (!%p302_p10, %s959_s9), 31  ;;  %s1604_s11 = smov (!%p308_p11, %s961_s11), 31 }
  0x2e   : > { %s960_s21 = sshll.u32 %s1602_s9, 2  ;;  %s962_s26 = sshll.u32 %s1604_s11, 3  ;;  %v1242_v16 = vmov (!%p963_p12), 0.0  }
  0x2f   : > { %s1349_s24 = scalar_lea.vmem %s1586_s1, %s960_s21  ;;  %s1354_s29 = scalar_lea.vmem %s1588_s3, %s962_s26  ;;  %318 = vst [vmem:[#allocation2] sm:$0xff] (!%p963_p12), %v1242_v16  ;;  %319 = vst [vmem:[#allocation2 + $0x8] sm:$0xff] (!%p963_p12), %v1242_v16 }
  0x30   : > { %317 = sbr.rel (%p963_p12) target bundleno = 55 (0x37), region = 77  ;;  %320 = vst [vmem:[#allocation2 + $0x10] sm:$0xff] (!%p963_p12), %v1242_v16  ;;  %321 = vst [vmem:[#allocation2 + $0x18] sm:$0xff] (!%p963_p12), %v1242_v16 }
  0x31   : > { %322 = vst [vmem:[#allocation2 + $0x20] sm:$0xff] (!%p963_p12), %v1242_v16  ;;  %323 = vst [vmem:[#allocation2 + $0x28] sm:$0xff] (!%p963_p12), %v1242_v16 }
  0x32   : > { %324 = vst [vmem:[#allocation2 + $0x30] sm:$0xff] (!%p963_p12), %v1242_v16  ;;  %325 = vst [vmem:[#allocation2 + $0x38] sm:$0xff] (!%p963_p12), %v1242_v16 }
  0x33   : > { %326 = vst [vmem:[#allocation2 + $0x40] sm:$0xff] (!%p963_p12), %v1242_v16  ;;  %327 = vst [vmem:[#allocation2 + $0x48] sm:$0xff] (!%p963_p12), %v1242_v16 }
  0x34   : > { %328 = vst [vmem:[#allocation2 + $0x50] sm:$0xff] (!%p963_p12), %v1242_v16  ;;  %329 = vst [vmem:[#allocation2 + $0x58] sm:$0xff] (!%p963_p12), %v1242_v16 }
  0x35   : > { %330 = vst [vmem:[#allocation2 + $0x60] sm:$0xff] (!%p963_p12), %v1242_v16  ;;  %331 = vst [vmem:[#allocation2 + $0x68] sm:$0xff] (!%p963_p12), %v1242_v16 }
  0x36   : > { %332 = vst [vmem:[#allocation2 + $0x70] sm:$0xff] (!%p963_p12), %v1242_v16  ;;  %333 = vst [vmem:[#allocation2 + $0x78] sm:$0xff] (!%p963_p12), %v1242_v16 }
  0x37 PF: > { %v1106_v17 = vld [vmem:[%s1349_s24] sm:$0xff]   ;;  %v1107_v18 = vld [vmem:[%s1349_s24 + $0x8] sm:$0xff]   ;;  %v1108_v19 = vld [vmem:[%s1349_s24 + $0x10] sm:$0xff]   ;;  %p980_p13 = scmp.ne.s32.totalorder %s1224_s14, 1 }
  0x38   : > { %1001 = vmatprep.subr.bf16.mxu0 %v1106_v17  ;;  %1033 = vmatprep.subr.bf16.mxu1 %v1106_v17  ;;  %v1109_v20 = vld [vmem:[%s1349_s24 + $0x18] sm:$0xff]   ;;  %v1114_v21 = vld [vmem:[%s1356_s12] sm:$0xff]   ;;  %v1111_v24 = vld [vmem:[%s1349_s24 + $0x28] sm:$0xff]  }
  0x39   : > { %1002 = vmatpush3.bf16.msra.mxu0 %v1106_v17  ;;  %1041 = vmatpush3.bf16.msra.mxu1 %v1106_v17  ;;  %v1115_v22 = vld [vmem:[%s1356_s12 + $0x20] sm:$0xff]   ;;  %v1112_v25 = vld [vmem:[%s1349_s24 + $0x30] sm:$0xff]   ;;  %v1113_v26 = vld [vmem:[%s1349_s24 + $0x38] sm:$0xff]  }
  0x3a   : > { %1003 = vmatprep.subr.bf16.mxu0 %v1107_v18  ;;  %1034 = vmatprep.subr.bf16.mxu1 %v1107_v18  ;;  %v1110_v23 = vld [vmem:[%s1349_s24 + $0x20] sm:$0xff]   ;;  %v1116_v27 = vld [vmem:[%s1356_s12 + $0x8] sm:$0xff]   ;;  %v1118_v29 = vld [vmem:[%s1356_s12 + $0x10] sm:$0xff]  }
  0x3b   : > { %1017 = vmatprep.mubr.bf16.mxu0 %v1114_v21  ;;  %1025 = vmatprep.mubr.bf16.mxu1 %v1115_v22  ;;  %v1117_v28 = vld [vmem:[%s1356_s12 + $0x28] sm:$0xff]   ;;  %v1119_v30 = vld [vmem:[%s1356_s12 + $0x30] sm:$0xff]   ;;  %v1120_v31 = vld [vmem:[%s1356_s12 + $0x18] sm:$0xff]  }
  0x3c   : > { %v1121_v32 = vld [vmem:[%s1356_s12 + $0x38] sm:$0xff]   ;;  %v336_v33 = vld [vmem:[#allocation2 + $0x10] sm:$0xff]  ;;  %v334_v35 = vld [vmem:[#allocation2] sm:$0xff] }
  0x3d   : > { %1004 = vmatpush3.bf16.msra.mxu0 %v1107_v18  ;;  %1042 = vmatpush3.bf16.msra.mxu1 %v1107_v18  ;;  %v344_v34 = vld [vmem:[#allocation2 + $0x50] sm:$0xff]  ;;  %v342_v36 = vld [vmem:[#allocation2 + $0x40] sm:$0xff]  ;;  %v337_v39 = vld [vmem:[#allocation2 + $0x18] sm:$0xff] }
  0x3e   : > { %1005 = vmatprep.subr.bf16.mxu0 %v1108_v19  ;;  %1035 = vmatprep.subr.bf16.mxu1 %v1108_v19  ;;  %v345_v40 = vld [vmem:[#allocation2 + $0x58] sm:$0xff]  ;;  %v335_v45 = vld [vmem:[#allocation2 + $0x8] sm:$0xff]  ;;  %v340_v57 = vld [vmem:[#allocation2 + $0x30] sm:$0xff] }
  0x3f   : > { %v343_v46 = vld [vmem:[#allocation2 + $0x48] sm:$0xff]  ;;  %v348_v58 = vld [vmem:[#allocation2 + $0x70] sm:$0xff]  ;;  %v338_v59 = vld [vmem:[#allocation2 + $0x20] sm:$0xff] }
  0x40   : > { %v346_v60 = vld [vmem:[#allocation2 + $0x60] sm:$0xff]  ;;  %v341_v63 = vld [vmem:[#allocation2 + $0x38] sm:$0xff]  ;;  %v339_v5 = vld [vmem:[#allocation2 + $0x28] sm:$0xff] }
  0x41   : > { %1006 = vmatpush3.bf16.msra.mxu0 %v1108_v19  ;;  %1043 = vmatpush3.bf16.msra.mxu1 %v1108_v19  ;;  %v349_v0 = vld [vmem:[#allocation2 + $0x78] sm:$0xff]  ;;  %v347_v6 = vld [vmem:[#allocation2 + $0x68] sm:$0xff]  ;;  %v1379_v18 = vld [vmem:[%s1587_s2] ss:$0 sm:$0xff] (!%p980_p13)  ;;  %v666_v19 = vlaneseq (!%p980_p13) }
  0x42   : > { %1007 = vmatprep.subr.bf16.mxu0 %v1109_v20  ;;  %1036 = vmatprep.subr.bf16.mxu1 %v1109_v20 }
  0x45   : > { %1008 = vmatpush3.bf16.msra.mxu0 %v1109_v20  ;;  %1044 = vmatpush3.bf16.msra.mxu1 %v1109_v20 }
  0x46   : > { %1009 = vmatprep.subr.bf16.mxu0 %v1110_v23  ;;  %1037 = vmatprep.subr.bf16.mxu1 %v1110_v23 }
  0x49   : > { %1010 = vmatpush3.bf16.msra.mxu0 %v1110_v23  ;;  %1045 = vmatpush3.bf16.msra.mxu1 %v1110_v23 }
  0x4a   : > { %1011 = vmatprep.subr.bf16.mxu0 %v1111_v24  ;;  %1038 = vmatprep.subr.bf16.mxu1 %v1111_v24 }
  0x4d   : > { %1012 = vmatpush3.bf16.msra.mxu0 %v1111_v24  ;;  %1046 = vmatpush3.bf16.msra.mxu1 %v1111_v24 }
  0x4e   : > { %1013 = vmatprep.subr.bf16.mxu0 %v1112_v25  ;;  %1039 = vmatprep.subr.bf16.mxu1 %v1112_v25 }
  0x51   : > { %1014 = vmatpush3.bf16.msra.mxu0 %v1112_v25  ;;  %1047 = vmatpush3.bf16.msra.mxu1 %v1112_v25 }
  0x52   : > { %1015 = vmatprep.subr.bf16.mxu0 %v1113_v26  ;;  %1040 = vmatprep.subr.bf16.mxu1 %v1113_v26 }
  0x55   : > { %1016 = vmatpush3.bf16.msra.mxu0 %v1113_v26  ;;  %1048 = vmatpush3.bf16.msra.mxu1 %v1113_v26  ;;  %v1383_v26 = vand.u32 (!%p980_p13), 127, %v666_v19 }
  0x57   : > { %vm668_vm0 = vcmp.lt.s32.totalorder (!%p980_p13), %v1383_v26, 8 }
  0x58   : > { %1018 = vmatmul.mubr.bf16.vlgmr.msra.gmra.mrb[0].mxu0 %v1116_v27  ;;  %1026 = vmatmul.mubr.bf16.vlgmr.msra.gmra.mrb[0].mxu1 %v1117_v28 }
  0x59   : > { %1021 = vmatprep.mubr.bf16.mxu0 %v1118_v29  ;;  %1029 = vmatprep.mubr.bf16.mxu1 %v1119_v30 }
  0x60   : > { %1022 = vmatmul.mubr.bf16.gmra.mrb[4].mxu0 %v1120_v31  ;;  %1030 = vmatmul.mubr.bf16.gmra.mrb[4].mxu1 %v1121_v32 }
 0x12b   : > { %v1019_v37 = vpop.f32.mrb[0].mxu0  ;;  %v1027_v38 = vpop.f32.mrb[0].mxu1 }
 0x12c   : > { %v577_v41 = vadd.f32 %v1019_v37, %v336_v33  ;;  %v585_v42 = vadd.f32 %v1027_v38, %v344_v34  ;;  %v512_v43 = vpop.f32.mrb[1].mxu0  ;;  %v544_v44 = vpop.f32.mrb[1].mxu1 }
 0x12d   : > { %v575_v47 = vadd.f32 %v512_v43, %v334_v35  ;;  %v583_v48 = vadd.f32 %v544_v44, %v342_v36  ;;  %v1020_v49 = vpop.f32.mrb[2].mxu0  ;;  %v1028_v50 = vpop.f32.mrb[2].mxu1 }
 0x12e   : > { %593 = vst [vmem:[#allocation2 + $0x10] sm:$0xff] %v577_v41  ;;  %601 = vst [vmem:[#allocation2 + $0x50] sm:$0xff] %v585_v42  ;;  %v578_v51 = vadd.f32 %v1020_v49, %v337_v39  ;;  %v586_v52 = vadd.f32 %v1028_v50, %v345_v40  ;;  %v515_v53 = vpop.f32.mrb[3].mxu0  ;;  %v547_v54 = vpop.f32.mrb[3].mxu1 }
 0x12f   : > { %591 = vst [vmem:[#allocation2] sm:$0xff] %v575_v47  ;;  %599 = vst [vmem:[#allocation2 + $0x40] sm:$0xff] %v583_v48  ;;  %v576_v55 = vadd.f32 %v515_v53, %v335_v45  ;;  %v584_v56 = vadd.f32 %v547_v54, %v343_v46 }
 0x130   : > { %594 = vst [vmem:[#allocation2 + $0x18] sm:$0xff] %v578_v51  ;;  %602 = vst [vmem:[#allocation2 + $0x58] sm:$0xff] %v586_v52 }
 0x131   : > { %592 = vst [vmem:[#allocation2 + $0x8] sm:$0xff] %v576_v55  ;;  %600 = vst [vmem:[#allocation2 + $0x48] sm:$0xff] %v584_v56 }
 0x133   : > { %v1023_v61 = vpop.f32.mrb[4].mxu0  ;;  %v1031_v62 = vpop.f32.mrb[4].mxu1  ;;  %610 = sbr.rel (%p980_p13) target bundleno = 663 (0x297), region = 81 }
 0x134   : > { %v581_v1 = vadd.f32 %v1023_v61, %v340_v57  ;;  %v589_v2 = vadd.f32 %v1031_v62, %v348_v58  ;;  %v528_v3 = vpop.f32.mrb[5].mxu0  ;;  %v560_v4 = vpop.f32.mrb[5].mxu1 }
 0x135   : > { %v579_v7 = vadd.f32 %v528_v3, %v338_v59  ;;  %v587_v8 = vadd.f32 %v560_v4, %v346_v60  ;;  %v1024_v9 = vpop.f32.mrb[6].mxu0  ;;  %v1032_v10 = vpop.f32.mrb[6].mxu1  ;;  %v613_v20 = vld [vmem:[#allocation2 + $0x10] sm:$0xff] (!%p980_p13) }
 0x136   : > { %597 = vst [vmem:[#allocation2 + $0x30] sm:$0xff] %v581_v1  ;;  %605 = vst [vmem:[#allocation2 + $0x70] sm:$0xff] %v589_v2  ;;  %v582_v11 = vadd.f32 %v1024_v9, %v341_v63  ;;  %v590_v12 = vadd.f32 %v1032_v10, %v349_v0  ;;  %v531_v13 = vpop.f32.mrb[7].mxu0  ;;  %v563_v14 = vpop.f32.mrb[7].mxu1  ;;  %v611_v17 = vld [vmem:[#allocation2] sm:$0xff] (!%p980_p13)  ;;  %v636_v22 = vadd.f32 (!%p980_p13), %v1379_v18, %v613_v20  ;;  %v621_v54 = vld [vmem:[#allocation2 + $0x50] sm:$0xff] (!%p980_p13) }
 0x137   : > { %595 = vst [vmem:[#allocation2 + $0x20] sm:$0xff] %v579_v7  ;;  %603 = vst [vmem:[#allocation2 + $0x60] sm:$0xff] %v587_v8  ;;  %v580_v15 = vadd.f32 %v531_v13, %v339_v5  ;;  %v588_v16 = vadd.f32 %v563_v14, %v347_v6  ;;  %v634_v21 = vadd.f32 (!%p980_p13), %v1379_v18, %v611_v17  ;;  %v614_v24 = vld [vmem:[#allocation2 + $0x18] sm:$0xff] (!%p980_p13)  ;;  %v619_v46 = vld [vmem:[#allocation2 + $0x40] sm:$0xff] (!%p980_p13) }
 0x138   : > { %598 = vst [vmem:[#allocation2 + $0x38] sm:$0xff] %v582_v11  ;;  %606 = vst [vmem:[#allocation2 + $0x78] sm:$0xff] %v590_v12  ;;  %v612_v23 = vld [vmem:[#allocation2 + $0x8] sm:$0xff] (!%p980_p13)  ;;  %v637_v28 = vadd.f32 (!%p980_p13), %v1379_v18, %v614_v24  ;;  %v652_v32 = vmax.f32 (!%p980_p13), %v636_v22, 0.0  ;;  %v642_v52 = vadd.f32 (!%p980_p13), %v1379_v18, %v619_v46  ;;  %v622_v55 = vld [vmem:[#allocation2 + $0x58] sm:$0xff] (!%p980_p13)  ;;  %v644_v57 = vadd.f32 (!%p980_p13), %v1379_v18, %v621_v54 }
 0x139   : > { %596 = vst [vmem:[#allocation2 + $0x28] sm:$0xff] %v580_v15  ;;  %604 = vst [vmem:[#allocation2 + $0x68] sm:$0xff] %v588_v16  ;;  %v635_v27 = vadd.f32 (!%p980_p13), %v1379_v18, %v612_v23  ;;  %v650_v31 = vmax.f32 (!%p980_p13), %v634_v21, 0.0  ;;  %v620_v47 = vld [vmem:[#allocation2 + $0x48] sm:$0xff] (!%p980_p13)  ;;  %v645_v61 = vadd.f32 (!%p980_p13), %v1379_v18, %v622_v55 }
 0x13a   : > { %v653_v36 = vmax.f32 %v637_v28, 0.0  ;;  %v1396_v39 = vsel %vm668_vm0, %v652_v32, -1e+30  ;;  %v643_v53 = vadd.f32 %v1379_v18, %v620_v47  ;;  %v658_v59 = vmax.f32 %v642_v52, 0.0 }
 0x13b   : > { %v651_v35 = vmax.f32 %v635_v27, 0.0  ;;  %v1392_v38 = vsel %vm668_vm0, %v650_v31, -1e+30  ;;  %689 = vmax.xlane.f32.xlu1 %v1396_v39  ;;  %v660_v5 = vmax.f32 %v644_v57, 0.0  ;;  %v661_v6 = vmax.f32 %v645_v61, 0.0 }
 0x13c   : > { %685 = vmax.xlane.f32.xlu0 %v1392_v38  ;;  %v1407_v43 = vsel %vm668_vm0, %v653_v36, -1e+30  ;;  %v659_v60 = vmax.f32 %v643_v53, 0.0  ;;  %v677_v3 = vsel %vm668_vm0, %v658_v59, -1e+30 }
 0x13d   : > { %v617_v34 = vld [vmem:[#allocation2 + $0x30] sm:$0xff]  ;;  %v1403_v42 = vsel %vm668_vm0, %v651_v35, -1e+30  ;;  %v1442_v10 = vsel %vm668_vm0, %v660_v5, -1e+30 }
 0x13e   : > { %v615_v25 = vld [vmem:[#allocation2 + $0x20] sm:$0xff]  ;;  %v640_v41 = vadd.f32 %v1379_v18, %v617_v34  ;;  %v625_v2 = vld [vmem:[#allocation2 + $0x70] sm:$0xff]  ;;  %v678_v4 = vsel %vm668_vm0, %v659_v60, -1e+30  ;;  %v1446_v11 = vsel %vm668_vm0, %v661_v6, -1e+30 }
 0x13f   : > { %v638_v29 = vadd.f32 %v1379_v18, %v615_v25  ;;  %v618_v37 = vld [vmem:[#allocation2 + $0x38] sm:$0xff]  ;;  %691 = vmax.xlane.f32.xlu1 %v1407_v43  ;;  %v623_v62 = vld [vmem:[#allocation2 + $0x60] sm:$0xff]  ;;  %v648_v9 = vadd.f32 %v1379_v18, %v625_v2 }
 0x140   : > { %v616_v30 = vld [vmem:[#allocation2 + $0x28] sm:$0xff]  ;;  %v641_v45 = vadd.f32 %v1379_v18, %v618_v37  ;;  %687 = vmax.xlane.f32.xlu0 %v1403_v42  ;;  %v656_v49 = vmax.f32 %v640_v41, 0.0  ;;  %v646_v0 = vadd.f32 %v1379_v18, %v623_v62  ;;  %v626_v7 = vld [vmem:[#allocation2 + $0x78] sm:$0xff] }
 0x141   : > { %v639_v33 = vadd.f32 %v1379_v18, %v616_v30  ;;  %v654_v40 = vmax.f32 %v638_v29, 0.0  ;;  %v624_v63 = vld [vmem:[#allocation2 + $0x68] sm:$0xff]  ;;  %v649_v13 = vadd.f32 %v1379_v18, %v626_v7  ;;  %v664_v16 = vmax.f32 %v648_v9, 0.0 }
 0x142   : > { %v657_v51 = vmax.f32 %v641_v45, 0.0  ;;  %v1426_v56 = vsel %vm668_vm0, %v656_v49, -1e+30  ;;  %v647_v1 = vadd.f32 %v1379_v18, %v624_v63  ;;  %v662_v8 = vmax.f32 %v646_v0, 0.0 }
 0x143   : > { %v655_v44 = vmax.f32 %v639_v33, 0.0  ;;  %v1414_v48 = vsel %vm668_vm0, %v654_v40, -1e+30  ;;  %v665_v17 = vmax.f32 %v649_v13, 0.0  ;;  %v1463_v18 = vsel %vm668_vm0, %v664_v16, -1e+30 }
 0x144   : > { %693 = vmax.xlane.f32.xlu0 %v1414_v48  ;;  %v676_v58 = vsel %vm668_vm0, %v657_v51, -1e+30  ;;  %v663_v12 = vmax.f32 %v647_v1, 0.0  ;;  %v1453_v14 = vsel %vm668_vm0, %v662_v8, -1e+30 }
 0x145   : > { %v1418_v50 = vsel %vm668_vm0, %v655_v44, -1e+30  ;;  %v1467_v19 = vsel %vm668_vm0, %v665_v17, -1e+30 }
 0x146   : > { %695 = vmax.xlane.f32.xlu1 %v1418_v50  ;;  %v1457_v15 = vsel %vm668_vm0, %v663_v12, -1e+30 }
 0x148   : > { %697 = vmax.xlane.f32.xlu0 %v1426_v56 }
 0x14a   : > { %699 = vmax.xlane.f32.xlu1 %v676_v58 }
 0x14c   : > { %701 = vmax.xlane.f32.xlu0 %v677_v3 }
 0x14e   : > { %703 = vmax.xlane.f32.xlu1 %v678_v4 }
 0x150   : > { %705 = vmax.xlane.f32.xlu0 %v1442_v10 }
 0x152   : > { %707 = vmax.xlane.f32.xlu1 %v1446_v11 }
 0x154   : > { %709 = vmax.xlane.f32.xlu0 %v1453_v14 }
 0x156   : > { %711 = vmax.xlane.f32.xlu1 %v1457_v15 }
 0x158   : > { %713 = vmax.xlane.f32.xlu0 %v1463_v18 }
 0x15a   : > { %715 = vmax.xlane.f32.xlu1 %v1467_v19 }
 0x1c8   : > { %v690_v21 = vpop.xlane.xlu1 %689 }
 0x1c9   : > { %v686_v20 = vpop.xlane.xlu0 %685  ;;  %v1475_v23 = vsub.f32 %v1396_v39, %v690_v21 }
 0x1ca   : > { %v1472_v22 = vsub.f32 %v1392_v38, %v686_v20 }
 0x1cb   : > { %v737_v25 = vmul.f32 1.442695, %v1475_v23 }
 0x1cc   : > { %v733_v24 = vmul.f32 1.442695, %v1472_v22  ;;  %v692_v26 = vpop.xlane.xlu1 %691 }
 0x1cd   : > { %v688_v27 = vpop.xlane.xlu0 %687  ;;  %v1483_v29 = vsub.f32 %v1407_v43, %v692_v26 }
 0x1ce   : > { %1122 = vpow2.f32 %v733_v24  ;;  %v1480_v28 = vsub.f32 %v1403_v42, %v688_v27 }
 0x1cf   : > { %1124 = vpow2.f32 %v737_v25  ;;  %v739_v31 = vmul.f32 1.442695, %v1483_v29 }
 0x1d0   : > { %v735_v30 = vmul.f32 1.442695, %v1480_v28 }
 0x1d1   : > { %v694_v32 = vpop.xlane.xlu0 %693 }
 0x1d2   : > { %1126 = vpow2.f32 %v735_v30  ;;  %v1488_v34 = vsub.f32 %v1414_v48, %v694_v32 }
 0x1d3   : > { %v696_v33 = vpop.xlane.xlu1 %695  ;;  %1128 = vpow2.f32 %v739_v31 }
 0x1d4   : > { %v1491_v35 = vsub.f32 %v1418_v50, %v696_v33  ;;  %v741_v36 = vmul.f32 1.442695, %v1488_v34 }
 0x1d5   : > { %v698_v38 = vpop.xlane.xlu0 %697 }
 0x1d6   : > { %v743_v37 = vmul.f32 1.442695, %v1491_v35  ;;  %1130 = vpow2.f32 %v741_v36  ;;  %v1496_v40 = vsub.f32 %v1426_v56, %v698_v38 }
 0x1d7   : > { %v700_v39 = vpop.xlane.xlu1 %699 }
 0x1d8   : > { %v1498_v41 = vsub.f32 %v676_v58, %v700_v39  ;;  %v1123_v42 = vpop.eup %1122  ;;  %1132 = vpow2.f32 %v743_v37  ;;  %v745_v43 = vmul.f32 1.442695, %v1496_v40 }
 0x1d9   : > { %765 = vadd.xlane.f32.xlu0 %v1123_v42  ;;  %v702_v45 = vpop.xlane.xlu0 %701  ;;  %v1125_v47 = vpop.eup %1124 }
 0x1da   : > { %v747_v44 = vmul.f32 1.442695, %v1498_v41  ;;  %1134 = vpow2.f32 %v745_v43  ;;  %v1502_v48 = vsub.f32 %v677_v3, %v702_v45 }
 0x1db   : > { %v704_v46 = vpop.xlane.xlu1 %703 }
 0x1dc   : > { %v1504_v49 = vsub.f32 %v678_v4, %v704_v46  ;;  %v1127_v50 = vpop.eup %1126  ;;  %1136 = vpow2.f32 %v747_v44  ;;  %v749_v51 = vmul.f32 1.442695, %v1502_v48 }
 0x1dd   : > { %769 = vadd.xlane.f32.xlu0 %v1125_v47  ;;  %767 = vadd.xlane.f32.xlu1 %v1127_v50  ;;  %v706_v53 = vpop.xlane.xlu0 %705  ;;  %v1129_v55 = vpop.eup %1128 }
 0x1de   : > { %v751_v52 = vmul.f32 1.442695, %v1504_v49  ;;  %1138 = vpow2.f32 %v749_v51  ;;  %v1509_v56 = vsub.f32 %v1442_v10, %v706_v53 }
 0x1df   : > { %v708_v54 = vpop.xlane.xlu1 %707 }
 0x1e0   : > { %v1512_v57 = vsub.f32 %v1446_v11, %v708_v54  ;;  %v1131_v58 = vpop.eup %1130  ;;  %1140 = vpow2.f32 %v751_v52  ;;  %v753_v59 = vmul.f32 1.442695, %v1509_v56 }
 0x1e1   : > { %771 = vadd.xlane.f32.xlu1 %v1129_v55  ;;  %773 = vadd.xlane.f32.xlu0 %v1131_v58  ;;  %v710_v61 = vpop.xlane.xlu0 %709 }
 0x1e2   : > { %v755_v60 = vmul.f32 1.442695, %v1512_v57  ;;  %v1133_v63 = vpop.eup %1132  ;;  %1142 = vpow2.f32 %v753_v59  ;;  %v1517_v0 = vsub.f32 %v1453_v14, %v710_v61 }
 0x1e3   : > { %v712_v62 = vpop.xlane.xlu1 %711 }
 0x1e4   : > { %v1520_v1 = vsub.f32 %v1457_v15, %v712_v62  ;;  %v1135_v2 = vpop.eup %1134  ;;  %1144 = vpow2.f32 %v755_v60  ;;  %v757_v3 = vmul.f32 1.442695, %v1517_v0 }
 0x1e5   : > { %775 = vadd.xlane.f32.xlu1 %v1133_v63  ;;  %777 = vadd.xlane.f32.xlu0 %v1135_v2  ;;  %v714_v5 = vpop.xlane.xlu0 %713 }
 0x1e6   : > { %v759_v4 = vmul.f32 1.442695, %v1520_v1  ;;  %v1137_v7 = vpop.eup %1136  ;;  %1146 = vpow2.f32 %v757_v3  ;;  %v1525_v8 = vsub.f32 %v1463_v18, %v714_v5 }
 0x1e7   : > { %v716_v6 = vpop.xlane.xlu1 %715 }
 0x1e8   : > { %v1528_v9 = vsub.f32 %v1467_v19, %v716_v6  ;;  %v1139_v10 = vpop.eup %1138  ;;  %1148 = vpow2.f32 %v759_v4  ;;  %v761_v11 = vmul.f32 1.442695, %v1525_v8 }
 0x1e9   : > { %779 = vadd.xlane.f32.xlu1 %v1137_v7  ;;  %781 = vadd.xlane.f32.xlu0 %v1139_v10 }
 0x1ea   : > { %v763_v12 = vmul.f32 1.442695, %v1528_v9  ;;  %v1141_v13 = vpop.eup %1140  ;;  %1150 = vpow2.f32 %v761_v11 }
 0x1ec   : > { %v1143_v14 = vpop.eup %1142  ;;  %1152 = vpow2.f32 %v763_v12 }
 0x1ed   : > { %783 = vadd.xlane.f32.xlu1 %v1141_v13  ;;  %785 = vadd.xlane.f32.xlu0 %v1143_v14 }
 0x1ee   : > { %v1145_v15 = vpop.eup %1144 }
 0x1f0   : > { %v1147_v16 = vpop.eup %1146 }
 0x1f1   : > { %787 = vadd.xlane.f32.xlu1 %v1145_v15  ;;  %789 = vadd.xlane.f32.xlu0 %v1147_v16 }
 0x1f2   : > { %v1149_v17 = vpop.eup %1148 }
 0x1f4   : > { %v1151_v18 = vpop.eup %1150 }
 0x1f5   : > { %791 = vadd.xlane.f32.xlu1 %v1149_v17  ;;  %793 = vadd.xlane.f32.xlu0 %v1151_v18 }
 0x1f6   : > { %v1153_v19 = vpop.eup %1152 }
 0x1f9   : > { %795 = vadd.xlane.f32.xlu1 %v1153_v19 }
 0x266   : > { %v766_v20 = vpop.xlane.xlu0 %765 }
 0x267   : > { %1154 = vlog2.f32 %v766_v20 }
 0x26a   : > { %v768_v21 = vpop.xlane.xlu1 %767  ;;  %v770_v24 = vpop.xlane.xlu0 %769 }
 0x26b   : > { %1156 = vlog2.f32 %v768_v21 }
 0x26c   : > { %1158 = vlog2.f32 %v770_v24 }
 0x26e   : > { %v772_v25 = vpop.xlane.xlu1 %771  ;;  %v774_v27 = vpop.xlane.xlu0 %773 }
 0x26f   : > { %1160 = vlog2.f32 %v772_v25 }
 0x270   : > { %1162 = vlog2.f32 %v774_v27 }
 0x271   : > { %v1155_v26 = vpop.eup %1154 }
 0x272   : > { %v798_v30 = vmul.f32 0.6931472, %v1155_v26  ;;  %v776_v31 = vpop.xlane.xlu1 %775  ;;  %v778_v32 = vpop.xlane.xlu0 %777 }
 0x273   : > { %1164 = vlog2.f32 %v776_v31 }
 0x274   : > { %v829_v33 = vsub.f32 %v1472_v22, %v798_v30  ;;  %1166 = vlog2.f32 %v778_v32 }
 0x275   : > { %v1157_v36 = vpop.eup %1156 }
 0x276   : > { %v1159_v37 = vpop.eup %1158  ;;  %845 = vst [vmem:[%s1354_s29] sm:$0xff] %v829_v33  ;;  %v800_v38 = vmul.f32 0.6931472, %v1157_v36  ;;  %v780_v39 = vpop.xlane.xlu1 %779 }
 0x277   : > { %v782_v42 = vpop.xlane.xlu0 %781  ;;  %v802_v43 = vmul.f32 0.6931472, %v1159_v37  ;;  %1168 = vlog2.f32 %v780_v39 }
 0x278   : > { %v830_v44 = vsub.f32 %v1480_v28, %v800_v38  ;;  %1170 = vlog2.f32 %v782_v42 }
 0x279   : > { %v1161_v45 = vpop.eup %1160  ;;  %v831_v46 = vsub.f32 %v1475_v23, %v802_v43 }
 0x27a   : > { %v1163_v47 = vpop.eup %1162  ;;  %846 = vst [vmem:[%s1354_s29 + $0x8] sm:$0xff] %v830_v44  ;;  %v804_v22 = vmul.f32 0.6931472, %v1161_v45  ;;  %v784_v50 = vpop.xlane.xlu1 %783 }
 0x27b   : > { %v786_v51 = vpop.xlane.xlu0 %785  ;;  %847 = vst [vmem:[%s1354_s29 + $0x10] sm:$0xff] %v831_v46  ;;  %v806_v52 = vmul.f32 0.6931472, %v1163_v47  ;;  %1172 = vlog2.f32 %v784_v50 }
 0x27c   : > { %v832_v53 = vsub.f32 %v1483_v29, %v804_v22  ;;  %1174 = vlog2.f32 %v786_v51 }
 0x27d   : > { %v1165_v54 = vpop.eup %1164  ;;  %v833_v28 = vsub.f32 %v1488_v34, %v806_v52 }
 0x27e   : > { %v1167_v55 = vpop.eup %1166  ;;  %848 = vst [vmem:[%s1354_s29 + $0x18] sm:$0xff] %v832_v53  ;;  %v808_v23 = vmul.f32 0.6931472, %v1165_v54  ;;  %v788_v58 = vpop.xlane.xlu1 %787 }
 0x27f   : > { %v790_v59 = vpop.xlane.xlu0 %789  ;;  %849 = vst [vmem:[%s1354_s29 + $0x20] sm:$0xff] %v833_v28  ;;  %v810_v60 = vmul.f32 0.6931472, %v1167_v55  ;;  %1176 = vlog2.f32 %v788_v58 }
 0x280   : > { %v834_v61 = vsub.f32 %v1491_v35, %v808_v23  ;;  %1178 = vlog2.f32 %v790_v59 }
 0x281   : > { %v1169_v62 = vpop.eup %1168  ;;  %v835_v29 = vsub.f32 %v1496_v40, %v810_v60 }
 0x282   : > { %v1171_v63 = vpop.eup %1170  ;;  %850 = vst [vmem:[%s1354_s29 + $0x28] sm:$0xff] %v834_v61  ;;  %v812_v34 = vmul.f32 0.6931472, %v1169_v62  ;;  %v792_v2 = vpop.xlane.xlu1 %791 }
 0x283   : > { %v794_v3 = vpop.xlane.xlu0 %793  ;;  %851 = vst [vmem:[%s1354_s29 + $0x30] sm:$0xff] %v835_v29  ;;  %v814_v4 = vmul.f32 0.6931472, %v1171_v63  ;;  %1180 = vlog2.f32 %v792_v2 }
 0x284   : > { %v836_v5 = vsub.f32 %v1498_v41, %v812_v34  ;;  %1182 = vlog2.f32 %v794_v3 }
 0x285   : > { %v1173_v35 = vpop.eup %1172  ;;  %v837_v6 = vsub.f32 %v1502_v48, %v814_v4 }
 0x286   : > { %v1175_v7 = vpop.eup %1174  ;;  %852 = vst [vmem:[%s1354_s29 + $0x38] sm:$0xff] %v836_v5  ;;  %v816_v40 = vmul.f32 0.6931472, %v1173_v35  ;;  %v796_v10 = vpop.xlane.xlu1 %795 }
 0x287   : > { %853 = vst [vmem:[%s1354_s29 + $0x40] sm:$0xff] %v837_v6  ;;  %v818_v11 = vmul.f32 0.6931472, %v1175_v7  ;;  %1184 = vlog2.f32 %v796_v10 }
 0x288   : > { %v838_v12 = vsub.f32 %v1504_v49, %v816_v40 }
 0x289   : > { %v1177_v13 = vpop.eup %1176  ;;  %v839_v14 = vsub.f32 %v1509_v56, %v818_v11 }
 0x28a   : > { %v1179_v41 = vpop.eup %1178  ;;  %854 = vst [vmem:[%s1354_s29 + $0x48] sm:$0xff] %v838_v12  ;;  %v820_v15 = vmul.f32 0.6931472, %v1177_v13 }
 0x28b   : > { %855 = vst [vmem:[%s1354_s29 + $0x50] sm:$0xff] %v839_v14  ;;  %v822_v48 = vmul.f32 0.6931472, %v1179_v41 }
 0x28c   : > { %v840_v16 = vsub.f32 %v1512_v57, %v820_v15 }
 0x28d   : > { %v1181_v17 = vpop.eup %1180  ;;  %v841_v18 = vsub.f32 %v1517_v0, %v822_v48 }
 0x28e   : > { %v1183_v19 = vpop.eup %1182  ;;  %856 = vst [vmem:[%s1354_s29 + $0x58] sm:$0xff] %v840_v16  ;;  %v824_v20 = vmul.f32 0.6931472, %v1181_v17 }
 0x28f   : > { %857 = vst [vmem:[%s1354_s29 + $0x60] sm:$0xff] %v841_v18  ;;  %v826_v49 = vmul.f32 0.6931472, %v1183_v19 }
 0x290   : > { %v842_v56 = vsub.f32 %v1520_v1, %v824_v20 }
 0x291   : > { %v1185_v21 = vpop.eup %1184  ;;  %v843_v24 = vsub.f32 %v1525_v8, %v826_v49 }
 0x292   : > { %858 = vst [vmem:[%s1354_s29 + $0x68] sm:$0xff] %v842_v56  ;;  %v828_v25 = vmul.f32 0.6931472, %v1185_v21 }
 0x293   : > { %859 = vst [vmem:[%s1354_s29 + $0x70] sm:$0xff] %v843_v24 }
 0x294   : > { %v844_v27 = vsub.f32 %v1528_v9, %v828_v25 }
 0x296   : > { %860 = vst [vmem:[%s1354_s29 + $0x78] sm:$0xff] %v844_v27 }
 0x297 PF: > { %s13_s18 = sadd.s32 1, %s1240_s18   ;;  %s1589_s12 = smov %s1220_s13 }
 0x298   : > { %p10_p0 = scmp.ge.s32.totalorder %s13_s18, 6   ;;  %s1590_s13 = smov %s1314_s25 }
 0x299   : > { %s1591_s14 = smov %s1232_s16  ;;  %s1592_s15 = smov %s1236_s17 }
 0x29a   : > { %s1593_s16 = smov %s1596_s19  ;;  %s1594_s17 = smov %s1600_s20 }
 0x29b   :  { %12 = sbr.rel (!%p10_p0) target bundleno = 4 (0x4), region = 119 }

</bundles_post_ra>
